<compile_context>
chip_gen: v7x
topology: tpu7x:2x2x1
jax: 0.10.0
libtpu: 0.0.40
codegen_flags: <defaults>
</compile_context>

<pallas_src>
import jax
import jax.numpy as jnp
from jax import lax
from jax.experimental import pallas as pl
from jax.experimental.pallas import tpu as pltpu

EPS_BN = 1e-5  # torch.nn.BatchNorm1d default eps


# ----------------------------------------------------------------------------
# Single fused kernel: encoder LSTM + real_classifier (Linear+BN+ReLU x2)
# PyTorch LSTM gate order: i, f, g, o
# ----------------------------------------------------------------------------
def discriminator_kernel(x_ref,                       # (T, B, 2) traj_rel
                         emb_w_ref, emb_b_ref,        # (2, E), (1, E)
                         wih_ref, whh_ref, b_ref,     # (E, 4H), (H, 4H), (1, 4H)
                         w0_ref, b0_ref, g0_ref, beta0_ref,   # (H, M), (1, M), (1, M), (1, M)
                         w1_ref, b1_ref, g1_ref, beta1_ref,   # (M, 1), (1, 1), (1, 1), (1, 1)
                         scores_ref):                 # (B, 1)
    T, B, _ = x_ref.shape
    H = whh_ref.shape[0]

    # --- fold spatial embedding into the LSTM input projection (one-time) ---------------
    # x @ We @ Wih == x @ (We @ Wih); bias: (be @ Wih) + (b_ih + b_hh)
    w_x = jnp.dot(emb_w_ref[...], wih_ref[...], preferred_element_type=jnp.float32)  # (2, 4H)
    b_x = jnp.dot(emb_b_ref[...], wih_ref[...], preferred_element_type=jnp.float32) + b_ref[...]

    # --- batched input projection for all T steps (contraction dim is 2 -> pure VPU) ----
    x = x_ref[...]                                                   # (T, B, 2)
    x_proj = (x[:, :, 0:1] * w_x[0:1, :]
              + x[:, :, 1:2] * w_x[1:2, :]
              + b_x)                                                 # (T, B, 4H)

    # --- fully-unrolled LSTM recurrence (T is a small compile-time constant) ------------
    whh = whh_ref[...]
    h = jnp.zeros((B, H), jnp.float32)
    c = jnp.zeros((B, H), jnp.float32)
    for t in range(T):
        gates = x_proj[t] + jnp.dot(h, whh, preferred_element_type=jnp.float32)  # (B, 4H)
        i = jax.nn.sigmoid(gates[:, 0 * H:1 * H])
        f = jax.nn.sigmoid(gates[:, 1 * H:2 * H])
        g = jnp.tanh(gates[:, 2 * H:3 * H])
        o = jax.nn.sigmoid(gates[:, 3 * H:4 * H])
        c = f * c + i * g
        h = o * jnp.tanh(c)

    # --- real_classifier: Linear -> BatchNorm1d (training-mode batch stats) -> ReLU, x2 -
    def linear_bn_relu(xx, w, bias, gamma, beta):
        y = jnp.dot(xx, w, preferred_element_type=jnp.float32) + bias
        mean = jnp.mean(y, axis=0, keepdims=True)
        var = jnp.mean((y - mean) ** 2, axis=0, keepdims=True)   # biased var (BN train mode)
        y_hat = (y - mean) * lax.rsqrt(var + EPS_BN)
        return jnp.maximum(y_hat * gamma + beta, 0.0)

    hid = linear_bn_relu(h, w0_ref[...], b0_ref[...], g0_ref[...], beta0_ref[...])   # (B, M)
    scores_ref[...] = linear_bn_relu(hid, w1_ref[...], b1_ref[...],
                                     g1_ref[...], beta1_ref[...])                    # (B, 1)


# ----------------------------------------------------------------------------
# Wrapper: single pallas_call, no grid (footprint << VMEM on v5e/v6e/v7x)
# ----------------------------------------------------------------------------
_VMEM = pl.BlockSpec(memory_space=pltpu.MemorySpace.VMEM)


def trajectory_discriminator_forward(params, traj, traj_rel, seq_start_end=None):
    # d_type='local' -> traj and seq_start_end are unused (no pooling path).
    del traj, seq_start_end
    T, B, _ = traj_rel.shape
    return pl.pallas_call(
        discriminator_kernel,
        out_shape=jax.ShapeDtypeStruct((B, 1), jnp.float32),
        in_specs=[_VMEM] * 14,
        out_specs=_VMEM,
    )(traj_rel,
      params["emb_w"], params["emb_b"],
      params["wih"], params["whh"], params["b"],
      params["cls_w0"], params["cls_b0"], params["cls_g0"], params["cls_beta0"],
      params["cls_w1"], params["cls_b1"], params["cls_g1"], params["cls_beta1"])


# ----------------------------------------------------------------------------
# deterministic parameter init (PyTorch-like uniform(-1/sqrt(fan), 1/sqrt(fan)))
# ----------------------------------------------------------------------------
def init_params(key, cfg):
    E, H, M = cfg["embedding_dim"], cfg["h_dim"], cfg["mlp_dim"]
    ks = jax.random.split(key, 10)

    def unif(k, shape, fan):
        bound = 1.0 / float(fan) ** 0.5
        return jax.random.uniform(k, shape, jnp.float32, -bound, bound)

    p = {}
    # Encoder.spatial_embedding: Linear(2, E)
    p["emb_w"] = unif(ks[0], (2, E), 2)
    p["emb_b"] = unif(ks[1], (1, E), 2)
    # Encoder LSTM(E, H)
    p["wih"] = unif(ks[2], (E, 4 * H), H)
    p["whh"] = unif(ks[3], (H, 4 * H), H)
    p["b"] = unif(ks[4], (1, 4 * H), H) + unif(ks[5], (1, 4 * H), H)   # b_ih + b_hh
    # real_classifier: [H, M, 1] with BN + ReLU after each Linear
    p["cls_w0"] = unif(ks[6], (H, M), H)
    p["cls_b0"] = unif(ks[7], (1, M), H)
    p["cls_g0"] = jnp.ones((1, M), jnp.float32)
    p["cls_beta0"] = jnp.zeros((1, M), jnp.float32)
    p["cls_w1"] = unif(ks[8], (M, 1), M)
    p["cls_b1"] = unif(ks[9], (1, 1), M)
    p["cls_g1"] = jnp.ones((1, 1), jnp.float32)
    p["cls_beta1"] = jnp.zeros((1, 1), jnp.float32)
    return p


# ----------------------------------------------------------------------------
# pure-JAX reference (unfused, mirrors the PyTorch module structure)
# ----------------------------------------------------------------------------
def reference_forward(params, traj, traj_rel, seq_start_end=None):
    del traj, seq_start_end
    T, B, _ = traj_rel.shape
    H = params["whh"].shape[0]
    h = jnp.zeros((B, H), jnp.float32)
    c = jnp.zeros((B, H), jnp.float32)
    for t in range(T):
        emb = traj_rel[t] @ params["emb_w"] + params["emb_b"]
        gates = emb @ params["wih"] + h @ params["whh"] + params["b"]
        i = jax.nn.sigmoid(gates[:, 0 * H:1 * H])
        f = jax.nn.sigmoid(gates[:, 1 * H:2 * H])
        g = jnp.tanh(gates[:, 2 * H:3 * H])
        o = jax.nn.sigmoid(gates[:, 3 * H:4 * H])
        c = f * c + i * g
        h = o * jnp.tanh(c)

    def bn_relu(y, gamma, beta):
        mean = y.mean(0, keepdims=True)
        var = ((y - mean) ** 2).mean(0, keepdims=True)
        return jnp.maximum((y - mean) / jnp.sqrt(var + EPS_BN) * gamma + beta, 0.0)

    x = bn_relu(h @ params["cls_w0"] + params["cls_b0"], params["cls_g0"], params["cls_beta0"])
    scores = bn_relu(x @ params["cls_w1"] + params["cls_b1"], params["cls_g1"], params["cls_beta1"])
    return scores


if __name__ == "__main__":
    cfg = dict(obs_len=8, pred_len=8, embedding_dim=32, h_dim=64, mlp_dim=128)
    B = 8
    T = cfg["obs_len"] + cfg["pred_len"]

    key = jax.random.PRNGKey(0)
    k_param, k_traj, k_rel = jax.random.split(key, 3)
    params = init_params(k_param, cfg)

    traj = jax.random.normal(k_traj, (T, B, 2), jnp.float32)
    traj_rel = jax.random.normal(k_rel, (T, B, 2), jnp.float32)
    seq_start_end = jnp.array([[0, B]], dtype=jnp.int32)  # unused: d_type='local'

    scores = trajectory_discriminator_forward(params, traj, traj_rel, seq_start_end)
    scores = jax.block_until_ready(scores)
    assert scores.shape == (B, 1), scores.shape

    ref = jax.block_until_ready(reference_forward(params, traj, traj_rel))
    assert jnp.allclose(scores, ref, atol=5e-2, rtol=5e-2), float(jnp.max(jnp.abs(scores - ref)))

    print("KERNEL_OK")
</pallas_src>

<mosaic_0001>
module attributes {stable_mosaic.version = 11 : i64} {
  func.func @discriminator_kernel(%arg0: memref<16x8x2xf32, #tpu.memory_space<vmem>>, %arg1: memref<2x32xf32, #tpu.memory_space<vmem>>, %arg2: memref<1x32xf32, #tpu.memory_space<vmem>>, %arg3: memref<32x256xf32, #tpu.memory_space<vmem>>, %arg4: memref<64x256xf32, #tpu.memory_space<vmem>>, %arg5: memref<1x256xf32, #tpu.memory_space<vmem>>, %arg6: memref<64x128xf32, #tpu.memory_space<vmem>>, %arg7: memref<1x128xf32, #tpu.memory_space<vmem>>, %arg8: memref<1x128xf32, #tpu.memory_space<vmem>>, %arg9: memref<1x128xf32, #tpu.memory_space<vmem>>, %arg10: memref<128x1xf32, #tpu.memory_space<vmem>>, %arg11: memref<1x1xf32, #tpu.memory_space<vmem>>, %arg12: memref<1x1xf32, #tpu.memory_space<vmem>>, %arg13: memref<1x1xf32, #tpu.memory_space<vmem>>, %arg14: memref<8x1xf32, #tpu.memory_space<vmem>>) attributes {dimension_semantics = [], scalar_prefetch = 0 : i64, scratch_operands = 0 : i64, tpu.core_type = #tpu.core_type<tc>} {
    %c0 = arith.constant 0 : index
    %c0_0 = arith.constant 0 : index
    %0 = vector.load %arg1[%c0, %c0_0] : memref<2x32xf32, #tpu.memory_space<vmem>>, vector<2x32xf32>
    %c0_1 = arith.constant 0 : index
    %c0_2 = arith.constant 0 : index
    %1 = vector.load %arg3[%c0_1, %c0_2] : memref<32x256xf32, #tpu.memory_space<vmem>>, vector<32x256xf32>
    %cst = arith.constant dense<0.000000e+00> : vector<2x256xf32>
    %2 = tpu.matmul %0, %1, %cst {dimension_numbers = #tpu.dot_dimension_numbers<[1], [0], [0], [1], [0, 0, 1, 1], [], []>} : vector<2x32xf32>, vector<32x256xf32>, vector<2x256xf32> -> vector<2x256xf32>
    %c0_3 = arith.constant 0 : index
    %c0_4 = arith.constant 0 : index
    %3 = vector.load %arg2[%c0_3, %c0_4] : memref<1x32xf32, #tpu.memory_space<vmem>>, vector<1x32xf32>
    %c0_5 = arith.constant 0 : index
    %c0_6 = arith.constant 0 : index
    %4 = vector.load %arg3[%c0_5, %c0_6] : memref<32x256xf32, #tpu.memory_space<vmem>>, vector<32x256xf32>
    %cst_7 = arith.constant dense<0.000000e+00> : vector<1x256xf32>
    %5 = tpu.matmul %3, %4, %cst_7 {dimension_numbers = #tpu.dot_dimension_numbers<[1], [0], [0], [1], [0, 0, 1, 1], [], []>} : vector<1x32xf32>, vector<32x256xf32>, vector<1x256xf32> -> vector<1x256xf32>
    %c0_8 = arith.constant 0 : index
    %c0_9 = arith.constant 0 : index
    %6 = vector.load %arg5[%c0_8, %c0_9] : memref<1x256xf32, #tpu.memory_space<vmem>>, vector<1x256xf32>
    %7 = arith.addf %5, %6 : vector<1x256xf32>
    %c0_10 = arith.constant 0 : index
    %c0_11 = arith.constant 0 : index
    %c0_12 = arith.constant 0 : index
    %8 = vector.load %arg0[%c0_10, %c0_11, %c0_12] : memref<16x8x2xf32, #tpu.memory_space<vmem>>, vector<16x8x2xf32>
    %9 = vector.extract_strided_slice %8 {offsets = [0, 0, 0], sizes = [16, 8, 1], strides = [1, 1, 1]} : vector<16x8x2xf32> to vector<16x8x1xf32>
    %10 = vector.extract_strided_slice %2 {offsets = [0, 0], sizes = [1, 256], strides = [1, 1]} : vector<2x256xf32> to vector<1x256xf32>
    %11 = vector.shape_cast %10 : vector<1x256xf32> to vector<1x1x256xf32>
    %12 = vector.broadcast %9 : vector<16x8x1xf32> to vector<16x8x256xf32>
    %13 = vector.broadcast %11 : vector<1x1x256xf32> to vector<16x8x256xf32>
    %14 = arith.mulf %12, %13 : vector<16x8x256xf32>
    %15 = vector.extract_strided_slice %8 {offsets = [0, 0, 1], sizes = [16, 8, 1], strides = [1, 1, 1]} : vector<16x8x2xf32> to vector<16x8x1xf32>
    %16 = vector.extract_strided_slice %2 {offsets = [1, 0], sizes = [1, 256], strides = [1, 1]} : vector<2x256xf32> to vector<1x256xf32>
    %17 = vector.shape_cast %16 : vector<1x256xf32> to vector<1x1x256xf32>
    %18 = vector.broadcast %15 : vector<16x8x1xf32> to vector<16x8x256xf32>
    %19 = vector.broadcast %17 : vector<1x1x256xf32> to vector<16x8x256xf32>
    %20 = arith.mulf %18, %19 : vector<16x8x256xf32>
    %21 = arith.addf %14, %20 : vector<16x8x256xf32>
    %22 = vector.shape_cast %7 : vector<1x256xf32> to vector<1x1x256xf32>
    %23 = vector.broadcast %22 : vector<1x1x256xf32> to vector<16x8x256xf32>
    %24 = arith.addf %21, %23 : vector<16x8x256xf32>
    %c0_13 = arith.constant 0 : index
    %c0_14 = arith.constant 0 : index
    %25 = vector.load %arg4[%c0_13, %c0_14] : memref<64x256xf32, #tpu.memory_space<vmem>>, vector<64x256xf32>
    %cst_15 = arith.constant 0.000000e+00 : f32
    %26 = vector.broadcast %cst_15 : f32 to vector<8x64xf32>
    %cst_16 = arith.constant 0.000000e+00 : f32
    %27 = vector.broadcast %cst_16 : f32 to vector<8x64xf32>
    %28 = vector.extract_strided_slice %24 {offsets = [0, 0, 0], sizes = [1, 8, 256], strides = [1, 1, 1]} : vector<16x8x256xf32> to vector<1x8x256xf32>
    %29 = vector.shape_cast %28 : vector<1x8x256xf32> to vector<8x256xf32>
    %cst_17 = arith.constant dense<0.000000e+00> : vector<8x256xf32>
    %30 = tpu.matmul %26, %25, %cst_17 {dimension_numbers = #tpu.dot_dimension_numbers<[1], [0], [0], [1], [0, 0, 1, 1], [], []>} : vector<8x64xf32>, vector<64x256xf32>, vector<8x256xf32> -> vector<8x256xf32>
    %31 = arith.addf %29, %30 : vector<8x256xf32>
    %32 = vector.extract_strided_slice %31 {offsets = [0, 0], sizes = [8, 64], strides = [1, 1]} : vector<8x256xf32> to vector<8x64xf32>
    %33 = arith.negf %32 : vector<8x64xf32>
    %34 = math.exp %33 : vector<8x64xf32>
    %cst_18 = arith.constant 1.000000e+00 : f32
    %35 = vector.broadcast %cst_18 : f32 to vector<8x64xf32>
    %36 = arith.addf %35, %34 : vector<8x64xf32>
    %37 = arith.divf %35, %36 : vector<8x64xf32>
    %38 = vector.extract_strided_slice %31 {offsets = [0, 64], sizes = [8, 64], strides = [1, 1]} : vector<8x256xf32> to vector<8x64xf32>
    %39 = arith.negf %38 : vector<8x64xf32>
    %40 = math.exp %39 : vector<8x64xf32>
    %cst_19 = arith.constant 1.000000e+00 : f32
    %41 = vector.broadcast %cst_19 : f32 to vector<8x64xf32>
    %42 = arith.addf %41, %40 : vector<8x64xf32>
    %43 = arith.divf %41, %42 : vector<8x64xf32>
    %44 = vector.extract_strided_slice %31 {offsets = [0, 128], sizes = [8, 64], strides = [1, 1]} : vector<8x256xf32> to vector<8x64xf32>
    %45 = math.tanh %44 : vector<8x64xf32>
    %46 = vector.extract_strided_slice %31 {offsets = [0, 192], sizes = [8, 64], strides = [1, 1]} : vector<8x256xf32> to vector<8x64xf32>
    %47 = arith.negf %46 : vector<8x64xf32>
    %48 = math.exp %47 : vector<8x64xf32>
    %cst_20 = arith.constant 1.000000e+00 : f32
    %49 = vector.broadcast %cst_20 : f32 to vector<8x64xf32>
    %50 = arith.addf %49, %48 : vector<8x64xf32>
    %51 = arith.divf %49, %50 : vector<8x64xf32>
    %52 = arith.mulf %43, %27 : vector<8x64xf32>
    %53 = arith.mulf %37, %45 : vector<8x64xf32>
    %54 = arith.addf %52, %53 : vector<8x64xf32>
    %55 = math.tanh %54 : vector<8x64xf32>
    %56 = arith.mulf %51, %55 : vector<8x64xf32>
    %57 = vector.extract_strided_slice %24 {offsets = [1, 0, 0], sizes = [1, 8, 256], strides = [1, 1, 1]} : vector<16x8x256xf32> to vector<1x8x256xf32>
    %58 = vector.shape_cast %57 : vector<1x8x256xf32> to vector<8x256xf32>
    %cst_21 = arith.constant dense<0.000000e+00> : vector<8x256xf32>
    %59 = tpu.matmul %56, %25, %cst_21 {dimension_numbers = #tpu.dot_dimension_numbers<[1], [0], [0], [1], [0, 0, 1, 1], [], []>} : vector<8x64xf32>, vector<64x256xf32>, vector<8x256xf32> -> vector<8x256xf32>
    %60 = arith.addf %58, %59 : vector<8x256xf32>
    %61 = vector.extract_strided_slice %60 {offsets = [0, 0], sizes = [8, 64], strides = [1, 1]} : vector<8x256xf32> to vector<8x64xf32>
    %62 = arith.negf %61 : vector<8x64xf32>
    %63 = math.exp %62 : vector<8x64xf32>
    %cst_22 = arith.constant 1.000000e+00 : f32
    %64 = vector.broadcast %cst_22 : f32 to vector<8x64xf32>
    %65 = arith.addf %64, %63 : vector<8x64xf32>
    %66 = arith.divf %64, %65 : vector<8x64xf32>
    %67 = vector.extract_strided_slice %60 {offsets = [0, 64], sizes = [8, 64], strides = [1, 1]} : vector<8x256xf32> to vector<8x64xf32>
    %68 = arith.negf %67 : vector<8x64xf32>
    %69 = math.exp %68 : vector<8x64xf32>
    %cst_23 = arith.constant 1.000000e+00 : f32
    %70 = vector.broadcast %cst_23 : f32 to vector<8x64xf32>
    %71 = arith.addf %70, %69 : vector<8x64xf32>
    %72 = arith.divf %70, %71 : vector<8x64xf32>
    %73 = vector.extract_strided_slice %60 {offsets = [0, 128], sizes = [8, 64], strides = [1, 1]} : vector<8x256xf32> to vector<8x64xf32>
    %74 = math.tanh %73 : vector<8x64xf32>
    %75 = vector.extract_strided_slice %60 {offsets = [0, 192], sizes = [8, 64], strides = [1, 1]} : vector<8x256xf32> to vector<8x64xf32>
    %76 = arith.negf %75 : vector<8x64xf32>
    %77 = math.exp %76 : vector<8x64xf32>
    %cst_24 = arith.constant 1.000000e+00 : f32
    %78 = vector.broadcast %cst_24 : f32 to vector<8x64xf32>
    %79 = arith.addf %78, %77 : vector<8x64xf32>
    %80 = arith.divf %78, %79 : vector<8x64xf32>
    %81 = arith.mulf %72, %54 : vector<8x64xf32>
    %82 = arith.mulf %66, %74 : vector<8x64xf32>
    %83 = arith.addf %81, %82 : vector<8x64xf32>
    %84 = math.tanh %83 : vector<8x64xf32>
    %85 = arith.mulf %80, %84 : vector<8x64xf32>
    %86 = vector.extract_strided_slice %24 {offsets = [2, 0, 0], sizes = [1, 8, 256], strides = [1, 1, 1]} : vector<16x8x256xf32> to vector<1x8x256xf32>
    %87 = vector.shape_cast %86 : vector<1x8x256xf32> to vector<8x256xf32>
    %cst_25 = arith.constant dense<0.000000e+00> : vector<8x256xf32>
    %88 = tpu.matmul %85, %25, %cst_25 {dimension_numbers = #tpu.dot_dimension_numbers<[1], [0], [0], [1], [0, 0, 1, 1], [], []>} : vector<8x64xf32>, vector<64x256xf32>, vector<8x256xf32> -> vector<8x256xf32>
    %89 = arith.addf %87, %88 : vector<8x256xf32>
    %90 = vector.extract_strided_slice %89 {offsets = [0, 0], sizes = [8, 64], strides = [1, 1]} : vector<8x256xf32> to vector<8x64xf32>
    %91 = arith.negf %90 : vector<8x64xf32>
    %92 = math.exp %91 : vector<8x64xf32>
    %cst_26 = arith.constant 1.000000e+00 : f32
    %93 = vector.broadcast %cst_26 : f32 to vector<8x64xf32>
    %94 = arith.addf %93, %92 : vector<8x64xf32>
    %95 = arith.divf %93, %94 : vector<8x64xf32>
    %96 = vector.extract_strided_slice %89 {offsets = [0, 64], sizes = [8, 64], strides = [1, 1]} : vector<8x256xf32> to vector<8x64xf32>
    %97 = arith.negf %96 : vector<8x64xf32>
    %98 = math.exp %97 : vector<8x64xf32>
    %cst_27 = arith.constant 1.000000e+00 : f32
    %99 = vector.broadcast %cst_27 : f32 to vector<8x64xf32>
    %100 = arith.addf %99, %98 : vector<8x64xf32>
    %101 = arith.divf %99, %100 : vector<8x64xf32>
    %102 = vector.extract_strided_slice %89 {offsets = [0, 128], sizes = [8, 64], strides = [1, 1]} : vector<8x256xf32> to vector<8x64xf32>
    %103 = math.tanh %102 : vector<8x64xf32>
    %104 = vector.extract_strided_slice %89 {offsets = [0, 192], sizes = [8, 64], strides = [1, 1]} : vector<8x256xf32> to vector<8x64xf32>
    %105 = arith.negf %104 : vector<8x64xf32>
    %106 = math.exp %105 : vector<8x64xf32>
    %cst_28 = arith.constant 1.000000e+00 : f32
    %107 = vector.broadcast %cst_28 : f32 to vector<8x64xf32>
    %108 = arith.addf %107, %106 : vector<8x64xf32>
    %109 = arith.divf %107, %108 : vector<8x64xf32>
    %110 = arith.mulf %101, %83 : vector<8x64xf32>
    %111 = arith.mulf %95, %103 : vector<8x64xf32>
    %112 = arith.addf %110, %111 : vector<8x64xf32>
    %113 = math.tanh %112 : vector<8x64xf32>
    %114 = arith.mulf %109, %113 : vector<8x64xf32>
    %115 = vector.extract_strided_slice %24 {offsets = [3, 0, 0], sizes = [1, 8, 256], strides = [1, 1, 1]} : vector<16x8x256xf32> to vector<1x8x256xf32>
    %116 = vector.shape_cast %115 : vector<1x8x256xf32> to vector<8x256xf32>
    %cst_29 = arith.constant dense<0.000000e+00> : vector<8x256xf32>
    %117 = tpu.matmul %114, %25, %cst_29 {dimension_numbers = #tpu.dot_dimension_numbers<[1], [0], [0], [1], [0, 0, 1, 1], [], []>} : vector<8x64xf32>, vector<64x256xf32>, vector<8x256xf32> -> vector<8x256xf32>
    %118 = arith.addf %116, %117 : vector<8x256xf32>
    %119 = vector.extract_strided_slice %118 {offsets = [0, 0], sizes = [8, 64], strides = [1, 1]} : vector<8x256xf32> to vector<8x64xf32>
    %120 = arith.negf %119 : vector<8x64xf32>
    %121 = math.exp %120 : vector<8x64xf32>
    %cst_30 = arith.constant 1.000000e+00 : f32
    %122 = vector.broadcast %cst_30 : f32 to vector<8x64xf32>
    %123 = arith.addf %122, %121 : vector<8x64xf32>
    %124 = arith.divf %122, %123 : vector<8x64xf32>
    %125 = vector.extract_strided_slice %118 {offsets = [0, 64], sizes = [8, 64], strides = [1, 1]} : vector<8x256xf32> to vector<8x64xf32>
    %126 = arith.negf %125 : vector<8x64xf32>
    %127 = math.exp %126 : vector<8x64xf32>
    %cst_31 = arith.constant 1.000000e+00 : f32
    %128 = vector.broadcast %cst_31 : f32 to vector<8x64xf32>
    %129 = arith.addf %128, %127 : vector<8x64xf32>
    %130 = arith.divf %128, %129 : vector<8x64xf32>
    %131 = vector.extract_strided_slice %118 {offsets = [0, 128], sizes = [8, 64], strides = [1, 1]} : vector<8x256xf32> to vector<8x64xf32>
    %132 = math.tanh %131 : vector<8x64xf32>
    %133 = vector.extract_strided_slice %118 {offsets = [0, 192], sizes = [8, 64], strides = [1, 1]} : vector<8x256xf32> to vector<8x64xf32>
    %134 = arith.negf %133 : vector<8x64xf32>
    %135 = math.exp %134 : vector<8x64xf32>
    %cst_32 = arith.constant 1.000000e+00 : f32
    %136 = vector.broadcast %cst_32 : f32 to vector<8x64xf32>
    %137 = arith.addf %136, %135 : vector<8x64xf32>
    %138 = arith.divf %136, %137 : vector<8x64xf32>
    %139 = arith.mulf %130, %112 : vector<8x64xf32>
    %140 = arith.mulf %124, %132 : vector<8x64xf32>
    %141 = arith.addf %139, %140 : vector<8x64xf32>
    %142 = math.tanh %141 : vector<8x64xf32>
    %143 = arith.mulf %138, %142 : vector<8x64xf32>
    %144 = vector.extract_strided_slice %24 {offsets = [4, 0, 0], sizes = [1, 8, 256], strides = [1, 1, 1]} : vector<16x8x256xf32> to vector<1x8x256xf32>
    %145 = vector.shape_cast %144 : vector<1x8x256xf32> to vector<8x256xf32>
    %cst_33 = arith.constant dense<0.000000e+00> : vector<8x256xf32>
    %146 = tpu.matmul %143, %25, %cst_33 {dimension_numbers = #tpu.dot_dimension_numbers<[1], [0], [0], [1], [0, 0, 1, 1], [], []>} : vector<8x64xf32>, vector<64x256xf32>, vector<8x256xf32> -> vector<8x256xf32>
    %147 = arith.addf %145, %146 : vector<8x256xf32>
    %148 = vector.extract_strided_slice %147 {offsets = [0, 0], sizes = [8, 64], strides = [1, 1]} : vector<8x256xf32> to vector<8x64xf32>
    %149 = arith.negf %148 : vector<8x64xf32>
    %150 = math.exp %149 : vector<8x64xf32>
    %cst_34 = arith.constant 1.000000e+00 : f32
    %151 = vector.broadcast %cst_34 : f32 to vector<8x64xf32>
    %152 = arith.addf %151, %150 : vector<8x64xf32>
    %153 = arith.divf %151, %152 : vector<8x64xf32>
    %154 = vector.extract_strided_slice %147 {offsets = [0, 64], sizes = [8, 64], strides = [1, 1]} : vector<8x256xf32> to vector<8x64xf32>
    %155 = arith.negf %154 : vector<8x64xf32>
    %156 = math.exp %155 : vector<8x64xf32>
    %cst_35 = arith.constant 1.000000e+00 : f32
    %157 = vector.broadcast %cst_35 : f32 to vector<8x64xf32>
    %158 = arith.addf %157, %156 : vector<8x64xf32>
    %159 = arith.divf %157, %158 : vector<8x64xf32>
    %160 = vector.extract_strided_slice %147 {offsets = [0, 128], sizes = [8, 64], strides = [1, 1]} : vector<8x256xf32> to vector<8x64xf32>
    %161 = math.tanh %160 : vector<8x64xf32>
    %162 = vector.extract_strided_slice %147 {offsets = [0, 192], sizes = [8, 64], strides = [1, 1]} : vector<8x256xf32> to vector<8x64xf32>
    %163 = arith.negf %162 : vector<8x64xf32>
    %164 = math.exp %163 : vector<8x64xf32>
    %cst_36 = arith.constant 1.000000e+00 : f32
    %165 = vector.broadcast %cst_36 : f32 to vector<8x64xf32>
    %166 = arith.addf %165, %164 : vector<8x64xf32>
    %167 = arith.divf %165, %166 : vector<8x64xf32>
    %168 = arith.mulf %159, %141 : vector<8x64xf32>
    %169 = arith.mulf %153, %161 : vector<8x64xf32>
    %170 = arith.addf %168, %169 : vector<8x64xf32>
    %171 = math.tanh %170 : vector<8x64xf32>
    %172 = arith.mulf %167, %171 : vector<8x64xf32>
    %173 = vector.extract_strided_slice %24 {offsets = [5, 0, 0], sizes = [1, 8, 256], strides = [1, 1, 1]} : vector<16x8x256xf32> to vector<1x8x256xf32>
    %174 = vector.shape_cast %173 : vector<1x8x256xf32> to vector<8x256xf32>
    %cst_37 = arith.constant dense<0.000000e+00> : vector<8x256xf32>
    %175 = tpu.matmul %172, %25, %cst_37 {dimension_numbers = #tpu.dot_dimension_numbers<[1], [0], [0], [1], [0, 0, 1, 1], [], []>} : vector<8x64xf32>, vector<64x256xf32>, vector<8x256xf32> -> vector<8x256xf32>
    %176 = arith.addf %174, %175 : vector<8x256xf32>
    %177 = vector.extract_strided_slice %176 {offsets = [0, 0], sizes = [8, 64], strides = [1, 1]} : vector<8x256xf32> to vector<8x64xf32>
    %178 = arith.negf %177 : vector<8x64xf32>
    %179 = math.exp %178 : vector<8x64xf32>
    %cst_38 = arith.constant 1.000000e+00 : f32
    %180 = vector.broadcast %cst_38 : f32 to vector<8x64xf32>
    %181 = arith.addf %180, %179 : vector<8x64xf32>
    %182 = arith.divf %180, %181 : vector<8x64xf32>
    %183 = vector.extract_strided_slice %176 {offsets = [0, 64], sizes = [8, 64], strides = [1, 1]} : vector<8x256xf32> to vector<8x64xf32>
    %184 = arith.negf %183 : vector<8x64xf32>
    %185 = math.exp %184 : vector<8x64xf32>
    %cst_39 = arith.constant 1.000000e+00 : f32
    %186 = vector.broadcast %cst_39 : f32 to vector<8x64xf32>
    %187 = arith.addf %186, %185 : vector<8x64xf32>
    %188 = arith.divf %186, %187 : vector<8x64xf32>
    %189 = vector.extract_strided_slice %176 {offsets = [0, 128], sizes = [8, 64], strides = [1, 1]} : vector<8x256xf32> to vector<8x64xf32>
    %190 = math.tanh %189 : vector<8x64xf32>
    %191 = vector.extract_strided_slice %176 {offsets = [0, 192], sizes = [8, 64], strides = [1, 1]} : vector<8x256xf32> to vector<8x64xf32>
    %192 = arith.negf %191 : vector<8x64xf32>
    %193 = math.exp %192 : vector<8x64xf32>
    %cst_40 = arith.constant 1.000000e+00 : f32
    %194 = vector.broadcast %cst_40 : f32 to vector<8x64xf32>
    %195 = arith.addf %194, %193 : vector<8x64xf32>
    %196 = arith.divf %194, %195 : vector<8x64xf32>
    %197 = arith.mulf %188, %170 : vector<8x64xf32>
    %198 = arith.mulf %182, %190 : vector<8x64xf32>
    %199 = arith.addf %197, %198 : vector<8x64xf32>
    %200 = math.tanh %199 : vector<8x64xf32>
    %201 = arith.mulf %196, %200 : vector<8x64xf32>
    %202 = vector.extract_strided_slice %24 {offsets = [6, 0, 0], sizes = [1, 8, 256], strides = [1, 1, 1]} : vector<16x8x256xf32> to vector<1x8x256xf32>
    %203 = vector.shape_cast %202 : vector<1x8x256xf32> to vector<8x256xf32>
    %cst_41 = arith.constant dense<0.000000e+00> : vector<8x256xf32>
    %204 = tpu.matmul %201, %25, %cst_41 {dimension_numbers = #tpu.dot_dimension_numbers<[1], [0], [0], [1], [0, 0, 1, 1], [], []>} : vector<8x64xf32>, vector<64x256xf32>, vector<8x256xf32> -> vector<8x256xf32>
    %205 = arith.addf %203, %204 : vector<8x256xf32>
    %206 = vector.extract_strided_slice %205 {offsets = [0, 0], sizes = [8, 64], strides = [1, 1]} : vector<8x256xf32> to vector<8x64xf32>
    %207 = arith.negf %206 : vector<8x64xf32>
    %208 = math.exp %207 : vector<8x64xf32>
    %cst_42 = arith.constant 1.000000e+00 : f32
    %209 = vector.broadcast %cst_42 : f32 to vector<8x64xf32>
    %210 = arith.addf %209, %208 : vector<8x64xf32>
    %211 = arith.divf %209, %210 : vector<8x64xf32>
    %212 = vector.extract_strided_slice %205 {offsets = [0, 64], sizes = [8, 64], strides = [1, 1]} : vector<8x256xf32> to vector<8x64xf32>
    %213 = arith.negf %212 : vector<8x64xf32>
    %214 = math.exp %213 : vector<8x64xf32>
    %cst_43 = arith.constant 1.000000e+00 : f32
    %215 = vector.broadcast %cst_43 : f32 to vector<8x64xf32>
    %216 = arith.addf %215, %214 : vector<8x64xf32>
    %217 = arith.divf %215, %216 : vector<8x64xf32>
    %218 = vector.extract_strided_slice %205 {offsets = [0, 128], sizes = [8, 64], strides = [1, 1]} : vector<8x256xf32> to vector<8x64xf32>
    %219 = math.tanh %218 : vector<8x64xf32>
    %220 = vector.extract_strided_slice %205 {offsets = [0, 192], sizes = [8, 64], strides = [1, 1]} : vector<8x256xf32> to vector<8x64xf32>
    %221 = arith.negf %220 : vector<8x64xf32>
    %222 = math.exp %221 : vector<8x64xf32>
    %cst_44 = arith.constant 1.000000e+00 : f32
    %223 = vector.broadcast %cst_44 : f32 to vector<8x64xf32>
    %224 = arith.addf %223, %222 : vector<8x64xf32>
    %225 = arith.divf %223, %224 : vector<8x64xf32>
    %226 = arith.mulf %217, %199 : vector<8x64xf32>
    %227 = arith.mulf %211, %219 : vector<8x64xf32>
    %228 = arith.addf %226, %227 : vector<8x64xf32>
    %229 = math.tanh %228 : vector<8x64xf32>
    %230 = arith.mulf %225, %229 : vector<8x64xf32>
    %231 = vector.extract_strided_slice %24 {offsets = [7, 0, 0], sizes = [1, 8, 256], strides = [1, 1, 1]} : vector<16x8x256xf32> to vector<1x8x256xf32>
    %232 = vector.shape_cast %231 : vector<1x8x256xf32> to vector<8x256xf32>
    %cst_45 = arith.constant dense<0.000000e+00> : vector<8x256xf32>
    %233 = tpu.matmul %230, %25, %cst_45 {dimension_numbers = #tpu.dot_dimension_numbers<[1], [0], [0], [1], [0, 0, 1, 1], [], []>} : vector<8x64xf32>, vector<64x256xf32>, vector<8x256xf32> -> vector<8x256xf32>
    %234 = arith.addf %232, %233 : vector<8x256xf32>
    %235 = vector.extract_strided_slice %234 {offsets = [0, 0], sizes = [8, 64], strides = [1, 1]} : vector<8x256xf32> to vector<8x64xf32>
    %236 = arith.negf %235 : vector<8x64xf32>
    %237 = math.exp %236 : vector<8x64xf32>
    %cst_46 = arith.constant 1.000000e+00 : f32
    %238 = vector.broadcast %cst_46 : f32 to vector<8x64xf32>
    %239 = arith.addf %238, %237 : vector<8x64xf32>
    %240 = arith.divf %238, %239 : vector<8x64xf32>
    %241 = vector.extract_strided_slice %234 {offsets = [0, 64], sizes = [8, 64], strides = [1, 1]} : vector<8x256xf32> to vector<8x64xf32>
    %242 = arith.negf %241 : vector<8x64xf32>
    %243 = math.exp %242 : vector<8x64xf32>
    %cst_47 = arith.constant 1.000000e+00 : f32
    %244 = vector.broadcast %cst_47 : f32 to vector<8x64xf32>
    %245 = arith.addf %244, %243 : vector<8x64xf32>
    %246 = arith.divf %244, %245 : vector<8x64xf32>
    %247 = vector.extract_strided_slice %234 {offsets = [0, 128], sizes = [8, 64], strides = [1, 1]} : vector<8x256xf32> to vector<8x64xf32>
    %248 = math.tanh %247 : vector<8x64xf32>
    %249 = vector.extract_strided_slice %234 {offsets = [0, 192], sizes = [8, 64], strides = [1, 1]} : vector<8x256xf32> to vector<8x64xf32>
    %250 = arith.negf %249 : vector<8x64xf32>
    %251 = math.exp %250 : vector<8x64xf32>
    %cst_48 = arith.constant 1.000000e+00 : f32
    %252 = vector.broadcast %cst_48 : f32 to vector<8x64xf32>
    %253 = arith.addf %252, %251 : vector<8x64xf32>
    %254 = arith.divf %252, %253 : vector<8x64xf32>
    %255 = arith.mulf %246, %228 : vector<8x64xf32>
    %256 = arith.mulf %240, %248 : vector<8x64xf32>
    %257 = arith.addf %255, %256 : vector<8x64xf32>
    %258 = math.tanh %257 : vector<8x64xf32>
    %259 = arith.mulf %254, %258 : vector<8x64xf32>
    %260 = vector.extract_strided_slice %24 {offsets = [8, 0, 0], sizes = [1, 8, 256], strides = [1, 1, 1]} : vector<16x8x256xf32> to vector<1x8x256xf32>
    %261 = vector.shape_cast %260 : vector<1x8x256xf32> to vector<8x256xf32>
    %cst_49 = arith.constant dense<0.000000e+00> : vector<8x256xf32>
    %262 = tpu.matmul %259, %25, %cst_49 {dimension_numbers = #tpu.dot_dimension_numbers<[1], [0], [0], [1], [0, 0, 1, 1], [], []>} : vector<8x64xf32>, vector<64x256xf32>, vector<8x256xf32> -> vector<8x256xf32>
    %263 = arith.addf %261, %262 : vector<8x256xf32>
    %264 = vector.extract_strided_slice %263 {offsets = [0, 0], sizes = [8, 64], strides = [1, 1]} : vector<8x256xf32> to vector<8x64xf32>
    %265 = arith.negf %264 : vector<8x64xf32>
    %266 = math.exp %265 : vector<8x64xf32>
    %cst_50 = arith.constant 1.000000e+00 : f32
    %267 = vector.broadcast %cst_50 : f32 to vector<8x64xf32>
    %268 = arith.addf %267, %266 : vector<8x64xf32>
    %269 = arith.divf %267, %268 : vector<8x64xf32>
    %270 = vector.extract_strided_slice %263 {offsets = [0, 64], sizes = [8, 64], strides = [1, 1]} : vector<8x256xf32> to vector<8x64xf32>
    %271 = arith.negf %270 : vector<8x64xf32>
    %272 = math.exp %271 : vector<8x64xf32>
    %cst_51 = arith.constant 1.000000e+00 : f32
    %273 = vector.broadcast %cst_51 : f32 to vector<8x64xf32>
    %274 = arith.addf %273, %272 : vector<8x64xf32>
    %275 = arith.divf %273, %274 : vector<8x64xf32>
    %276 = vector.extract_strided_slice %263 {offsets = [0, 128], sizes = [8, 64], strides = [1, 1]} : vector<8x256xf32> to vector<8x64xf32>
    %277 = math.tanh %276 : vector<8x64xf32>
    %278 = vector.extract_strided_slice %263 {offsets = [0, 192], sizes = [8, 64], strides = [1, 1]} : vector<8x256xf32> to vector<8x64xf32>
    %279 = arith.negf %278 : vector<8x64xf32>
    %280 = math.exp %279 : vector<8x64xf32>
    %cst_52 = arith.constant 1.000000e+00 : f32
    %281 = vector.broadcast %cst_52 : f32 to vector<8x64xf32>
    %282 = arith.addf %281, %280 : vector<8x64xf32>
    %283 = arith.divf %281, %282 : vector<8x64xf32>
    %284 = arith.mulf %275, %257 : vector<8x64xf32>
    %285 = arith.mulf %269, %277 : vector<8x64xf32>
    %286 = arith.addf %284, %285 : vector<8x64xf32>
    %287 = math.tanh %286 : vector<8x64xf32>
    %288 = arith.mulf %283, %287 : vector<8x64xf32>
    %289 = vector.extract_strided_slice %24 {offsets = [9, 0, 0], sizes = [1, 8, 256], strides = [1, 1, 1]} : vector<16x8x256xf32> to vector<1x8x256xf32>
    %290 = vector.shape_cast %289 : vector<1x8x256xf32> to vector<8x256xf32>
    %cst_53 = arith.constant dense<0.000000e+00> : vector<8x256xf32>
    %291 = tpu.matmul %288, %25, %cst_53 {dimension_numbers = #tpu.dot_dimension_numbers<[1], [0], [0], [1], [0, 0, 1, 1], [], []>} : vector<8x64xf32>, vector<64x256xf32>, vector<8x256xf32> -> vector<8x256xf32>
    %292 = arith.addf %290, %291 : vector<8x256xf32>
    %293 = vector.extract_strided_slice %292 {offsets = [0, 0], sizes = [8, 64], strides = [1, 1]} : vector<8x256xf32> to vector<8x64xf32>
    %294 = arith.negf %293 : vector<8x64xf32>
    %295 = math.exp %294 : vector<8x64xf32>
    %cst_54 = arith.constant 1.000000e+00 : f32
    %296 = vector.broadcast %cst_54 : f32 to vector<8x64xf32>
    %297 = arith.addf %296, %295 : vector<8x64xf32>
    %298 = arith.divf %296, %297 : vector<8x64xf32>
    %299 = vector.extract_strided_slice %292 {offsets = [0, 64], sizes = [8, 64], strides = [1, 1]} : vector<8x256xf32> to vector<8x64xf32>
    %300 = arith.negf %299 : vector<8x64xf32>
    %301 = math.exp %300 : vector<8x64xf32>
    %cst_55 = arith.constant 1.000000e+00 : f32
    %302 = vector.broadcast %cst_55 : f32 to vector<8x64xf32>
    %303 = arith.addf %302, %301 : vector<8x64xf32>
    %304 = arith.divf %302, %303 : vector<8x64xf32>
    %305 = vector.extract_strided_slice %292 {offsets = [0, 128], sizes = [8, 64], strides = [1, 1]} : vector<8x256xf32> to vector<8x64xf32>
    %306 = math.tanh %305 : vector<8x64xf32>
    %307 = vector.extract_strided_slice %292 {offsets = [0, 192], sizes = [8, 64], strides = [1, 1]} : vector<8x256xf32> to vector<8x64xf32>
    %308 = arith.negf %307 : vector<8x64xf32>
    %309 = math.exp %308 : vector<8x64xf32>
    %cst_56 = arith.constant 1.000000e+00 : f32
    %310 = vector.broadcast %cst_56 : f32 to vector<8x64xf32>
    %311 = arith.addf %310, %309 : vector<8x64xf32>
    %312 = arith.divf %310, %311 : vector<8x64xf32>
    %313 = arith.mulf %304, %286 : vector<8x64xf32>
    %314 = arith.mulf %298, %306 : vector<8x64xf32>
    %315 = arith.addf %313, %314 : vector<8x64xf32>
    %316 = math.tanh %315 : vector<8x64xf32>
    %317 = arith.mulf %312, %316 : vector<8x64xf32>
    %318 = vector.extract_strided_slice %24 {offsets = [10, 0, 0], sizes = [1, 8, 256], strides = [1, 1, 1]} : vector<16x8x256xf32> to vector<1x8x256xf32>
    %319 = vector.shape_cast %318 : vector<1x8x256xf32> to vector<8x256xf32>
    %cst_57 = arith.constant dense<0.000000e+00> : vector<8x256xf32>
    %320 = tpu.matmul %317, %25, %cst_57 {dimension_numbers = #tpu.dot_dimension_numbers<[1], [0], [0], [1], [0, 0, 1, 1], [], []>} : vector<8x64xf32>, vector<64x256xf32>, vector<8x256xf32> -> vector<8x256xf32>
    %321 = arith.addf %319, %320 : vector<8x256xf32>
    %322 = vector.extract_strided_slice %321 {offsets = [0, 0], sizes = [8, 64], strides = [1, 1]} : vector<8x256xf32> to vector<8x64xf32>
    %323 = arith.negf %322 : vector<8x64xf32>
    %324 = math.exp %323 : vector<8x64xf32>
    %cst_58 = arith.constant 1.000000e+00 : f32
    %325 = vector.broadcast %cst_58 : f32 to vector<8x64xf32>
    %326 = arith.addf %325, %324 : vector<8x64xf32>
    %327 = arith.divf %325, %326 : vector<8x64xf32>
    %328 = vector.extract_strided_slice %321 {offsets = [0, 64], sizes = [8, 64], strides = [1, 1]} : vector<8x256xf32> to vector<8x64xf32>
    %329 = arith.negf %328 : vector<8x64xf32>
    %330 = math.exp %329 : vector<8x64xf32>
    %cst_59 = arith.constant 1.000000e+00 : f32
    %331 = vector.broadcast %cst_59 : f32 to vector<8x64xf32>
    %332 = arith.addf %331, %330 : vector<8x64xf32>
    %333 = arith.divf %331, %332 : vector<8x64xf32>
    %334 = vector.extract_strided_slice %321 {offsets = [0, 128], sizes = [8, 64], strides = [1, 1]} : vector<8x256xf32> to vector<8x64xf32>
    %335 = math.tanh %334 : vector<8x64xf32>
    %336 = vector.extract_strided_slice %321 {offsets = [0, 192], sizes = [8, 64], strides = [1, 1]} : vector<8x256xf32> to vector<8x64xf32>
    %337 = arith.negf %336 : vector<8x64xf32>
    %338 = math.exp %337 : vector<8x64xf32>
    %cst_60 = arith.constant 1.000000e+00 : f32
    %339 = vector.broadcast %cst_60 : f32 to vector<8x64xf32>
    %340 = arith.addf %339, %338 : vector<8x64xf32>
    %341 = arith.divf %339, %340 : vector<8x64xf32>
    %342 = arith.mulf %333, %315 : vector<8x64xf32>
    %343 = arith.mulf %327, %335 : vector<8x64xf32>
    %344 = arith.addf %342, %343 : vector<8x64xf32>
    %345 = math.tanh %344 : vector<8x64xf32>
    %346 = arith.mulf %341, %345 : vector<8x64xf32>
    %347 = vector.extract_strided_slice %24 {offsets = [11, 0, 0], sizes = [1, 8, 256], strides = [1, 1, 1]} : vector<16x8x256xf32> to vector<1x8x256xf32>
    %348 = vector.shape_cast %347 : vector<1x8x256xf32> to vector<8x256xf32>
    %cst_61 = arith.constant dense<0.000000e+00> : vector<8x256xf32>
    %349 = tpu.matmul %346, %25, %cst_61 {dimension_numbers = #tpu.dot_dimension_numbers<[1], [0], [0], [1], [0, 0, 1, 1], [], []>} : vector<8x64xf32>, vector<64x256xf32>, vector<8x256xf32> -> vector<8x256xf32>
    %350 = arith.addf %348, %349 : vector<8x256xf32>
    %351 = vector.extract_strided_slice %350 {offsets = [0, 0], sizes = [8, 64], strides = [1, 1]} : vector<8x256xf32> to vector<8x64xf32>
    %352 = arith.negf %351 : vector<8x64xf32>
    %353 = math.exp %352 : vector<8x64xf32>
    %cst_62 = arith.constant 1.000000e+00 : f32
    %354 = vector.broadcast %cst_62 : f32 to vector<8x64xf32>
    %355 = arith.addf %354, %353 : vector<8x64xf32>
    %356 = arith.divf %354, %355 : vector<8x64xf32>
    %357 = vector.extract_strided_slice %350 {offsets = [0, 64], sizes = [8, 64], strides = [1, 1]} : vector<8x256xf32> to vector<8x64xf32>
    %358 = arith.negf %357 : vector<8x64xf32>
    %359 = math.exp %358 : vector<8x64xf32>
    %cst_63 = arith.constant 1.000000e+00 : f32
    %360 = vector.broadcast %cst_63 : f32 to vector<8x64xf32>
    %361 = arith.addf %360, %359 : vector<8x64xf32>
    %362 = arith.divf %360, %361 : vector<8x64xf32>
    %363 = vector.extract_strided_slice %350 {offsets = [0, 128], sizes = [8, 64], strides = [1, 1]} : vector<8x256xf32> to vector<8x64xf32>
    %364 = math.tanh %363 : vector<8x64xf32>
    %365 = vector.extract_strided_slice %350 {offsets = [0, 192], sizes = [8, 64], strides = [1, 1]} : vector<8x256xf32> to vector<8x64xf32>
    %366 = arith.negf %365 : vector<8x64xf32>
    %367 = math.exp %366 : vector<8x64xf32>
    %cst_64 = arith.constant 1.000000e+00 : f32
    %368 = vector.broadcast %cst_64 : f32 to vector<8x64xf32>
    %369 = arith.addf %368, %367 : vector<8x64xf32>
    %370 = arith.divf %368, %369 : vector<8x64xf32>
    %371 = arith.mulf %362, %344 : vector<8x64xf32>
    %372 = arith.mulf %356, %364 : vector<8x64xf32>
    %373 = arith.addf %371, %372 : vector<8x64xf32>
    %374 = math.tanh %373 : vector<8x64xf32>
    %375 = arith.mulf %370, %374 : vector<8x64xf32>
    %376 = vector.extract_strided_slice %24 {offsets = [12, 0, 0], sizes = [1, 8, 256], strides = [1, 1, 1]} : vector<16x8x256xf32> to vector<1x8x256xf32>
    %377 = vector.shape_cast %376 : vector<1x8x256xf32> to vector<8x256xf32>
    %cst_65 = arith.constant dense<0.000000e+00> : vector<8x256xf32>
    %378 = tpu.matmul %375, %25, %cst_65 {dimension_numbers = #tpu.dot_dimension_numbers<[1], [0], [0], [1], [0, 0, 1, 1], [], []>} : vector<8x64xf32>, vector<64x256xf32>, vector<8x256xf32> -> vector<8x256xf32>
    %379 = arith.addf %377, %378 : vector<8x256xf32>
    %380 = vector.extract_strided_slice %379 {offsets = [0, 0], sizes = [8, 64], strides = [1, 1]} : vector<8x256xf32> to vector<8x64xf32>
    %381 = arith.negf %380 : vector<8x64xf32>
    %382 = math.exp %381 : vector<8x64xf32>
    %cst_66 = arith.constant 1.000000e+00 : f32
    %383 = vector.broadcast %cst_66 : f32 to vector<8x64xf32>
    %384 = arith.addf %383, %382 : vector<8x64xf32>
    %385 = arith.divf %383, %384 : vector<8x64xf32>
    %386 = vector.extract_strided_slice %379 {offsets = [0, 64], sizes = [8, 64], strides = [1, 1]} : vector<8x256xf32> to vector<8x64xf32>
    %387 = arith.negf %386 : vector<8x64xf32>
    %388 = math.exp %387 : vector<8x64xf32>
    %cst_67 = arith.constant 1.000000e+00 : f32
    %389 = vector.broadcast %cst_67 : f32 to vector<8x64xf32>
    %390 = arith.addf %389, %388 : vector<8x64xf32>
    %391 = arith.divf %389, %390 : vector<8x64xf32>
    %392 = vector.extract_strided_slice %379 {offsets = [0, 128], sizes = [8, 64], strides = [1, 1]} : vector<8x256xf32> to vector<8x64xf32>
    %393 = math.tanh %392 : vector<8x64xf32>
    %394 = vector.extract_strided_slice %379 {offsets = [0, 192], sizes = [8, 64], strides = [1, 1]} : vector<8x256xf32> to vector<8x64xf32>
    %395 = arith.negf %394 : vector<8x64xf32>
    %396 = math.exp %395 : vector<8x64xf32>
    %cst_68 = arith.constant 1.000000e+00 : f32
    %397 = vector.broadcast %cst_68 : f32 to vector<8x64xf32>
    %398 = arith.addf %397, %396 : vector<8x64xf32>
    %399 = arith.divf %397, %398 : vector<8x64xf32>
    %400 = arith.mulf %391, %373 : vector<8x64xf32>
    %401 = arith.mulf %385, %393 : vector<8x64xf32>
    %402 = arith.addf %400, %401 : vector<8x64xf32>
    %403 = math.tanh %402 : vector<8x64xf32>
    %404 = arith.mulf %399, %403 : vector<8x64xf32>
    %405 = vector.extract_strided_slice %24 {offsets = [13, 0, 0], sizes = [1, 8, 256], strides = [1, 1, 1]} : vector<16x8x256xf32> to vector<1x8x256xf32>
    %406 = vector.shape_cast %405 : vector<1x8x256xf32> to vector<8x256xf32>
    %cst_69 = arith.constant dense<0.000000e+00> : vector<8x256xf32>
    %407 = tpu.matmul %404, %25, %cst_69 {dimension_numbers = #tpu.dot_dimension_numbers<[1], [0], [0], [1], [0, 0, 1, 1], [], []>} : vector<8x64xf32>, vector<64x256xf32>, vector<8x256xf32> -> vector<8x256xf32>
    %408 = arith.addf %406, %407 : vector<8x256xf32>
    %409 = vector.extract_strided_slice %408 {offsets = [0, 0], sizes = [8, 64], strides = [1, 1]} : vector<8x256xf32> to vector<8x64xf32>
    %410 = arith.negf %409 : vector<8x64xf32>
    %411 = math.exp %410 : vector<8x64xf32>
    %cst_70 = arith.constant 1.000000e+00 : f32
    %412 = vector.broadcast %cst_70 : f32 to vector<8x64xf32>
    %413 = arith.addf %412, %411 : vector<8x64xf32>
    %414 = arith.divf %412, %413 : vector<8x64xf32>
    %415 = vector.extract_strided_slice %408 {offsets = [0, 64], sizes = [8, 64], strides = [1, 1]} : vector<8x256xf32> to vector<8x64xf32>
    %416 = arith.negf %415 : vector<8x64xf32>
    %417 = math.exp %416 : vector<8x64xf32>
    %cst_71 = arith.constant 1.000000e+00 : f32
    %418 = vector.broadcast %cst_71 : f32 to vector<8x64xf32>
    %419 = arith.addf %418, %417 : vector<8x64xf32>
    %420 = arith.divf %418, %419 : vector<8x64xf32>
    %421 = vector.extract_strided_slice %408 {offsets = [0, 128], sizes = [8, 64], strides = [1, 1]} : vector<8x256xf32> to vector<8x64xf32>
    %422 = math.tanh %421 : vector<8x64xf32>
    %423 = vector.extract_strided_slice %408 {offsets = [0, 192], sizes = [8, 64], strides = [1, 1]} : vector<8x256xf32> to vector<8x64xf32>
    %424 = arith.negf %423 : vector<8x64xf32>
    %425 = math.exp %424 : vector<8x64xf32>
    %cst_72 = arith.constant 1.000000e+00 : f32
    %426 = vector.broadcast %cst_72 : f32 to vector<8x64xf32>
    %427 = arith.addf %426, %425 : vector<8x64xf32>
    %428 = arith.divf %426, %427 : vector<8x64xf32>
    %429 = arith.mulf %420, %402 : vector<8x64xf32>
    %430 = arith.mulf %414, %422 : vector<8x64xf32>
    %431 = arith.addf %429, %430 : vector<8x64xf32>
    %432 = math.tanh %431 : vector<8x64xf32>
    %433 = arith.mulf %428, %432 : vector<8x64xf32>
    %434 = vector.extract_strided_slice %24 {offsets = [14, 0, 0], sizes = [1, 8, 256], strides = [1, 1, 1]} : vector<16x8x256xf32> to vector<1x8x256xf32>
    %435 = vector.shape_cast %434 : vector<1x8x256xf32> to vector<8x256xf32>
    %cst_73 = arith.constant dense<0.000000e+00> : vector<8x256xf32>
    %436 = tpu.matmul %433, %25, %cst_73 {dimension_numbers = #tpu.dot_dimension_numbers<[1], [0], [0], [1], [0, 0, 1, 1], [], []>} : vector<8x64xf32>, vector<64x256xf32>, vector<8x256xf32> -> vector<8x256xf32>
    %437 = arith.addf %435, %436 : vector<8x256xf32>
    %438 = vector.extract_strided_slice %437 {offsets = [0, 0], sizes = [8, 64], strides = [1, 1]} : vector<8x256xf32> to vector<8x64xf32>
    %439 = arith.negf %438 : vector<8x64xf32>
    %440 = math.exp %439 : vector<8x64xf32>
    %cst_74 = arith.constant 1.000000e+00 : f32
    %441 = vector.broadcast %cst_74 : f32 to vector<8x64xf32>
    %442 = arith.addf %441, %440 : vector<8x64xf32>
    %443 = arith.divf %441, %442 : vector<8x64xf32>
    %444 = vector.extract_strided_slice %437 {offsets = [0, 64], sizes = [8, 64], strides = [1, 1]} : vector<8x256xf32> to vector<8x64xf32>
    %445 = arith.negf %444 : vector<8x64xf32>
    %446 = math.exp %445 : vector<8x64xf32>
    %cst_75 = arith.constant 1.000000e+00 : f32
    %447 = vector.broadcast %cst_75 : f32 to vector<8x64xf32>
    %448 = arith.addf %447, %446 : vector<8x64xf32>
    %449 = arith.divf %447, %448 : vector<8x64xf32>
    %450 = vector.extract_strided_slice %437 {offsets = [0, 128], sizes = [8, 64], strides = [1, 1]} : vector<8x256xf32> to vector<8x64xf32>
    %451 = math.tanh %450 : vector<8x64xf32>
    %452 = vector.extract_strided_slice %437 {offsets = [0, 192], sizes = [8, 64], strides = [1, 1]} : vector<8x256xf32> to vector<8x64xf32>
    %453 = arith.negf %452 : vector<8x64xf32>
    %454 = math.exp %453 : vector<8x64xf32>
    %cst_76 = arith.constant 1.000000e+00 : f32
    %455 = vector.broadcast %cst_76 : f32 to vector<8x64xf32>
    %456 = arith.addf %455, %454 : vector<8x64xf32>
    %457 = arith.divf %455, %456 : vector<8x64xf32>
    %458 = arith.mulf %449, %431 : vector<8x64xf32>
    %459 = arith.mulf %443, %451 : vector<8x64xf32>
    %460 = arith.addf %458, %459 : vector<8x64xf32>
    %461 = math.tanh %460 : vector<8x64xf32>
    %462 = arith.mulf %457, %461 : vector<8x64xf32>
    %463 = vector.extract_strided_slice %24 {offsets = [15, 0, 0], sizes = [1, 8, 256], strides = [1, 1, 1]} : vector<16x8x256xf32> to vector<1x8x256xf32>
    %464 = vector.shape_cast %463 : vector<1x8x256xf32> to vector<8x256xf32>
    %cst_77 = arith.constant dense<0.000000e+00> : vector<8x256xf32>
    %465 = tpu.matmul %462, %25, %cst_77 {dimension_numbers = #tpu.dot_dimension_numbers<[1], [0], [0], [1], [0, 0, 1, 1], [], []>} : vector<8x64xf32>, vector<64x256xf32>, vector<8x256xf32> -> vector<8x256xf32>
    %466 = arith.addf %464, %465 : vector<8x256xf32>
    %467 = vector.extract_strided_slice %466 {offsets = [0, 0], sizes = [8, 64], strides = [1, 1]} : vector<8x256xf32> to vector<8x64xf32>
    %468 = arith.negf %467 : vector<8x64xf32>
    %469 = math.exp %468 : vector<8x64xf32>
    %cst_78 = arith.constant 1.000000e+00 : f32
    %470 = vector.broadcast %cst_78 : f32 to vector<8x64xf32>
    %471 = arith.addf %470, %469 : vector<8x64xf32>
    %472 = arith.divf %470, %471 : vector<8x64xf32>
    %473 = vector.extract_strided_slice %466 {offsets = [0, 64], sizes = [8, 64], strides = [1, 1]} : vector<8x256xf32> to vector<8x64xf32>
    %474 = arith.negf %473 : vector<8x64xf32>
    %475 = math.exp %474 : vector<8x64xf32>
    %cst_79 = arith.constant 1.000000e+00 : f32
    %476 = vector.broadcast %cst_79 : f32 to vector<8x64xf32>
    %477 = arith.addf %476, %475 : vector<8x64xf32>
    %478 = arith.divf %476, %477 : vector<8x64xf32>
    %479 = vector.extract_strided_slice %466 {offsets = [0, 128], sizes = [8, 64], strides = [1, 1]} : vector<8x256xf32> to vector<8x64xf32>
    %480 = math.tanh %479 : vector<8x64xf32>
    %481 = vector.extract_strided_slice %466 {offsets = [0, 192], sizes = [8, 64], strides = [1, 1]} : vector<8x256xf32> to vector<8x64xf32>
    %482 = arith.negf %481 : vector<8x64xf32>
    %483 = math.exp %482 : vector<8x64xf32>
    %cst_80 = arith.constant 1.000000e+00 : f32
    %484 = vector.broadcast %cst_80 : f32 to vector<8x64xf32>
    %485 = arith.addf %484, %483 : vector<8x64xf32>
    %486 = arith.divf %484, %485 : vector<8x64xf32>
    %487 = arith.mulf %478, %460 : vector<8x64xf32>
    %488 = arith.mulf %472, %480 : vector<8x64xf32>
    %489 = arith.addf %487, %488 : vector<8x64xf32>
    %490 = math.tanh %489 : vector<8x64xf32>
    %491 = arith.mulf %486, %490 : vector<8x64xf32>
    %c0_81 = arith.constant 0 : index
    %c0_82 = arith.constant 0 : index
    %492 = vector.load %arg6[%c0_81, %c0_82] : memref<64x128xf32, #tpu.memory_space<vmem>>, vector<64x128xf32>
    %c0_83 = arith.constant 0 : index
    %c0_84 = arith.constant 0 : index
    %493 = vector.load %arg7[%c0_83, %c0_84] : memref<1x128xf32, #tpu.memory_space<vmem>>, vector<1x128xf32>
    %c0_85 = arith.constant 0 : index
    %c0_86 = arith.constant 0 : index
    %494 = vector.load %arg8[%c0_85, %c0_86] : memref<1x128xf32, #tpu.memory_space<vmem>>, vector<1x128xf32>
    %c0_87 = arith.constant 0 : index
    %c0_88 = arith.constant 0 : index
    %495 = vector.load %arg9[%c0_87, %c0_88] : memref<1x128xf32, #tpu.memory_space<vmem>>, vector<1x128xf32>
    %cst_89 = arith.constant dense<0.000000e+00> : vector<8x128xf32>
    %496 = tpu.matmul %491, %492, %cst_89 {dimension_numbers = #tpu.dot_dimension_numbers<[1], [0], [0], [1], [0, 0, 1, 1], [], []>} : vector<8x64xf32>, vector<64x128xf32>, vector<8x128xf32> -> vector<8x128xf32>
    %497 = vector.broadcast %493 : vector<1x128xf32> to vector<8x128xf32>
    %498 = arith.addf %496, %497 : vector<8x128xf32>
    %cst_90 = arith.constant dense<0.000000e+00> : vector<128xf32>
    %499 = vector.multi_reduction <add>, %498, %cst_90 [0] : vector<8x128xf32> to vector<128xf32>
    %500 = vector.shape_cast %499 : vector<128xf32> to vector<1x128xf32>
    %cst_91 = arith.constant 8.000000e+00 : f32
    %501 = vector.broadcast %cst_91 : f32 to vector<1x128xf32>
    %502 = arith.divf %500, %501 : vector<1x128xf32>
    %503 = vector.broadcast %502 : vector<1x128xf32> to vector<8x128xf32>
    %504 = arith.subf %498, %503 : vector<8x128xf32>
    %505 = arith.mulf %504, %504 : vector<8x128xf32>
    %cst_92 = arith.constant dense<0.000000e+00> : vector<128xf32>
    %506 = vector.multi_reduction <add>, %505, %cst_92 [0] : vector<8x128xf32> to vector<128xf32>
    %507 = vector.shape_cast %506 : vector<128xf32> to vector<1x128xf32>
    %cst_93 = arith.constant 8.000000e+00 : f32
    %508 = vector.broadcast %cst_93 : f32 to vector<1x128xf32>
    %509 = arith.divf %507, %508 : vector<1x128xf32>
    %510 = vector.broadcast %502 : vector<1x128xf32> to vector<8x128xf32>
    %511 = arith.subf %498, %510 : vector<8x128xf32>
    %cst_94 = arith.constant 9.99999974E-6 : f32
    %512 = vector.broadcast %cst_94 : f32 to vector<1x128xf32>
    %513 = arith.addf %509, %512 : vector<1x128xf32>
    %514 = math.rsqrt %513 : vector<1x128xf32>
    %515 = vector.broadcast %514 : vector<1x128xf32> to vector<8x128xf32>
    %516 = arith.mulf %511, %515 : vector<8x128xf32>
    %517 = vector.broadcast %494 : vector<1x128xf32> to vector<8x128xf32>
    %518 = arith.mulf %516, %517 : vector<8x128xf32>
    %519 = vector.broadcast %495 : vector<1x128xf32> to vector<8x128xf32>
    %520 = arith.addf %518, %519 : vector<8x128xf32>
    %cst_95 = arith.constant 0.000000e+00 : f32
    %521 = vector.broadcast %cst_95 : f32 to vector<8x128xf32>
    %522 = arith.maximumf %520, %521 : vector<8x128xf32>
    %c0_96 = arith.constant 0 : index
    %c0_97 = arith.constant 0 : index
    %523 = vector.load %arg10[%c0_96, %c0_97] : memref<128x1xf32, #tpu.memory_space<vmem>>, vector<128x1xf32>
    %c0_98 = arith.constant 0 : index
    %c0_99 = arith.constant 0 : index
    %524 = vector.load %arg11[%c0_98, %c0_99] : memref<1x1xf32, #tpu.memory_space<vmem>>, vector<1x1xf32>
    %c0_100 = arith.constant 0 : index
    %c0_101 = arith.constant 0 : index
    %525 = vector.load %arg12[%c0_100, %c0_101] : memref<1x1xf32, #tpu.memory_space<vmem>>, vector<1x1xf32>
    %c0_102 = arith.constant 0 : index
    %c0_103 = arith.constant 0 : index
    %526 = vector.load %arg13[%c0_102, %c0_103] : memref<1x1xf32, #tpu.memory_space<vmem>>, vector<1x1xf32>
    %cst_104 = arith.constant dense<0.000000e+00> : vector<8x1xf32>
    %527 = tpu.matmul %522, %523, %cst_104 {dimension_numbers = #tpu.dot_dimension_numbers<[1], [0], [0], [1], [0, 0, 1, 1], [], []>} : vector<8x128xf32>, vector<128x1xf32>, vector<8x1xf32> -> vector<8x1xf32>
    %528 = vector.broadcast %524 : vector<1x1xf32> to vector<8x1xf32>
    %529 = arith.addf %527, %528 : vector<8x1xf32>
    %cst_105 = arith.constant dense<0.000000e+00> : vector<1xf32>
    %530 = vector.multi_reduction <add>, %529, %cst_105 [0] : vector<8x1xf32> to vector<1xf32>
    %531 = vector.shape_cast %530 : vector<1xf32> to vector<1x1xf32>
    %cst_106 = arith.constant 8.000000e+00 : f32
    %532 = vector.broadcast %cst_106 : f32 to vector<1x1xf32>
    %533 = arith.divf %531, %532 : vector<1x1xf32>
    %534 = vector.broadcast %533 : vector<1x1xf32> to vector<8x1xf32>
    %535 = arith.subf %529, %534 : vector<8x1xf32>
    %536 = arith.mulf %535, %535 : vector<8x1xf32>
    %cst_107 = arith.constant dense<0.000000e+00> : vector<1xf32>
    %537 = vector.multi_reduction <add>, %536, %cst_107 [0] : vector<8x1xf32> to vector<1xf32>
    %538 = vector.shape_cast %537 : vector<1xf32> to vector<1x1xf32>
    %cst_108 = arith.constant 8.000000e+00 : f32
    %539 = vector.broadcast %cst_108 : f32 to vector<1x1xf32>
    %540 = arith.divf %538, %539 : vector<1x1xf32>
    %541 = vector.broadcast %533 : vector<1x1xf32> to vector<8x1xf32>
    %542 = arith.subf %529, %541 : vector<8x1xf32>
    %cst_109 = arith.constant 9.99999974E-6 : f32
    %543 = vector.broadcast %cst_109 : f32 to vector<1x1xf32>
    %544 = arith.addf %540, %543 : vector<1x1xf32>
    %545 = math.rsqrt %544 : vector<1x1xf32>
    %546 = vector.broadcast %545 : vector<1x1xf32> to vector<8x1xf32>
    %547 = arith.mulf %542, %546 : vector<8x1xf32>
    %548 = vector.broadcast %525 : vector<1x1xf32> to vector<8x1xf32>
    %549 = arith.mulf %547, %548 : vector<8x1xf32>
    %550 = vector.broadcast %526 : vector<1x1xf32> to vector<8x1xf32>
    %551 = arith.addf %549, %550 : vector<8x1xf32>
    %cst_110 = arith.constant 0.000000e+00 : f32
    %552 = vector.broadcast %cst_110 : f32 to vector<8x1xf32>
    %553 = arith.maximumf %551, %552 : vector<8x1xf32>
    %c0_111 = arith.constant 0 : index
    %c0_112 = arith.constant 0 : index
    %554 = vector.load %arg14[%c0_111, %c0_112] : memref<8x1xf32, #tpu.memory_space<vmem>>, vector<8x1xf32>
    tpu.vector_store %arg14[%c0_111, %c0_112], %553 {strides = array<i32>} : memref<8x1xf32, #tpu.memory_space<vmem>>, vector<8x1xf32>,
    return
  }
}

</mosaic_0001>

<bundles_post_ra>
// kernel: tpu_custom_call.1
= control target key start
LH: loop header
LB: loop body
LE: loop exit
PB: predicated region body
PF: predicated region fallthrough
CT: control target
= control target key end

     0   :  { %v3064_v3 = vmov 0.0   ;;  %v3065_v4 = vmov 0   ;;  %vm62_vm0 = vcmask 261120   ;;  %v3066_v36 = vmov 1   ;;  %s3713_s3 = inlined_call_operand.vmem [shape: f32[32,256], index: 3, kind: input, shape index: {}]   ;;  %s3714_s4 = inlined_call_operand.vmem [shape: f32[64,256], index: 4, kind: input, shape index: {}]   ;;  %s3715_s1 = inlined_call_operand.vmem [shape: f32[2,32], index: 1, kind: input, shape index: {}]   ;;  %s3716_s0 = inlined_call_operand.vmem [shape: f32[16,8,2], index: 0, kind: input, shape index: {}]   ;;  %s3717_s2 = inlined_call_operand.vmem [shape: f32[1,32], index: 2, kind: input, shape index: {}]   ;;  %s3718_s5 = inlined_call_operand.vmem [shape: f32[1,256], index: 5, kind: input, shape index: {}]   ;;  %s3719_s6 = inlined_call_operand.vmem [shape: f32[64,128], index: 6, kind: input, shape index: {}]   ;;  %s3720_s10 = inlined_call_operand.vmem [shape: f32[128,1], index: 10, kind: input, shape index: {}]   ;;  %s3721_s11 = inlined_call_operand.<no memory space> [shape: f32[1,1], index: 11, kind: input, shape index: {}]   ;;  %s3722_s12 = inlined_call_operand.<no memory space> [shape: f32[1,1], index: 12, kind: input, shape index: {}]   ;;  %s3723_s13 = inlined_call_operand.<no memory space> [shape: f32[1,1], index: 13, kind: input, shape index: {}]   ;;  %s3724_s7 = inlined_call_operand.vmem [shape: f32[1,128], index: 7, kind: input, shape index: {}]   ;;  %s3725_s8 = inlined_call_operand.vmem [shape: f32[1,128], index: 8, kind: input, shape index: {}]   ;;  %s3726_s9 = inlined_call_operand.vmem [shape: f32[1,128], index: 9, kind: input, shape index: {}]   ;;  %s3727_s14 = inlined_call_operand.vmem [shape: f32[8,1], index: 14, kind: output, shape index: {}]  }
   0x1   :  { %v55_v0 = vld [vmem:[%s3713_s3 + $0x8] sm:$0xff]  ;;  %v57_v1 = vld [vmem:[%s3713_s3 + $0x18] sm:$0xff]  ;;  %v54_v2 = vld [vmem:[%s3713_s3] sm:$0xff]  ;;  %130 = vmatprep.mubr.f32.mxu0 %v3064_v3  ;;  %2865 = vset.pattern.permute.xlu0 %v3065_v4  ;;  %v140_v44 = vlaneseq  ;;  %vm552_vm1 = vcmask 523264   ;;  %vm3069_vm2 = vmmov 0   ;;  %vm2373_vm3 = vcmask 7168  }
   0x2   :  { %v2551_v5 = vpack.c.bf16 %v57_v1, %v55_v0  ;;  %v56_v6 = vld [vmem:[%s3713_s3 + $0x10] sm:$0xff]  ;;  %v59_v7 = vld [vmem:[%s3713_s3 + $0x28] sm:$0xff]  ;;  %v61_v8 = vld [vmem:[%s3713_s3 + $0x38] sm:$0xff]  ;;  %2867 = vset.pattern.permute.xlu1 %v3065_v4  ;;  %720 = vmatprep.mubr.f32.mxu1 %v3064_v3 }
   0x3   :  { %v2553_v9 = vpack.c.bf16 %v56_v6, %v54_v2  ;;  %v2555_v10 = vpack.c.bf16 %v61_v8, %v59_v7  ;;  %v58_v11 = vld [vmem:[%s3713_s3 + $0x20] sm:$0xff]  ;;  %v60_v12 = vld [vmem:[%s3713_s3 + $0x30] sm:$0xff]  ;;  %v537_v13 = vld [vmem:[%s3714_s4 + $0x8] sm:$0xff]  ;;  %v141_v46 = vshrl.u32 %v140_v44, 7 }
   0x4   :  { %2552 = vmatprep.subr.bf16.mxu0 %v2551_v5  ;;  %v539_v14 = vld [vmem:[%s3714_s4 + $0x18] sm:$0xff]  ;;  %v2557_v15 = vpack.c.bf16 %v60_v12, %v58_v11  ;;  %v536_v17 = vld [vmem:[%s3714_s4] sm:$0xff]  ;;  %v538_v18 = vld [vmem:[%s3714_s4 + $0x10] sm:$0xff] }
   0x5   :  { %2554 = vmatpush1.bf16.msra.mxu0 %v2553_v9  ;;  %v3177_v16 = vpack.c.bf16 %v539_v14, %v537_v13  ;;  %v541_v19 = vld [vmem:[%s3714_s4 + $0x28] sm:$0xff]  ;;  %v3188_v20 = vpack.c.bf16 %v538_v18, %v536_v17  ;;  %v543_v21 = vld [vmem:[%s3714_s4 + $0x38] sm:$0xff]  ;;  %v540_v23 = vld [vmem:[%s3714_s4 + $0x20] sm:$0xff]  ;;  %v142_v49 = vsub.s32 0, %v141_v46  ;;  %v146_v50 = vsub.s32 1, %v141_v46 }
   0x6   :  { %2556 = vmatprep.subr.bf16.mxu0 %v2555_v10  ;;  %v3193_v22 = vpack.c.bf16 %v543_v21, %v541_v19  ;;  %v542_v24 = vld [vmem:[%s3714_s4 + $0x30] sm:$0xff]  ;;  %v53_v25 = vld [vmem:[%s3715_s1] sm:$0x3]  ;;  %v545_v28 = vld [vmem:[%s3714_s4 + $0x48] sm:$0xff] }
   0x7   :  { %2584 = vmatprep.subr.bf16.mxu1 %v3177_v16  ;;  %v224_v26 = vld [vmem:[%s3716_s0] sm:$0xff]  ;;  %v3210_v27 = vpack.c.bf16 %v542_v24, %v540_v23  ;;  %v547_v29 = vld [vmem:[%s3714_s4 + $0x58] sm:$0xff]  ;;  %v546_v31 = vld [vmem:[%s3714_s4 + $0x50] sm:$0xff] }
   0x8   :  { %2586 = vmatpush1.bf16.msra.mxu1 %v3188_v20  ;;  %242 = vperm.xlu0 %2865, %v224_v26   ;;  %v544_v30 = vld [vmem:[%s3714_s4 + $0x40] sm:$0xff]  ;;  %v549_v32 = vld [vmem:[%s3714_s4 + $0x68] sm:$0xff]  ;;  %v551_v33 = vld [vmem:[%s3714_s4 + $0x78] sm:$0xff]  ;;  %v3233_v34 = vpack.c.bf16 %v547_v29, %v545_v28 }
   0x9   :  { %2558 = vmatpush1.bf16.msra.mxu0 %v2557_v15  ;;  %2588 = vmatprep.subr.bf16.mxu1 %v3193_v22  ;;  %v3235_v35 = vpack.c.bf16 %v546_v31, %v544_v30  ;;  %v3237_v37 = vpack.c.bf16 %v551_v33, %v549_v32  ;;  %v548_v38 = vld [vmem:[%s3714_s4 + $0x60] sm:$0xff]  ;;  %v550_v39 = vld [vmem:[%s3714_s4 + $0x70] sm:$0xff]  ;;  %v3249_v40 = vld [vmem:[%s3716_s0 + $0x8] sm:$0xff] }
   0xa   :  { %2560 = vmatprep.subr.bf16.mxu0 %v2551_v5  ;;  %v137_v41 = vld [vmem:[%s3717_s2] sm:$0x1]  ;;  %v3257_v42 = vpack.c.bf16 %v550_v39, %v548_v38 }
   0xb   :  { %v138_v47 = vld [vmem:[%s3718_s5] sm:$0x3]  ;;  %s3067_s5 = smov 64  }
   0xc   :  { %2415 = vmatmul.mubr.msk.f32.vlgmr.msra.gmra.mrb[0].mxu0 %vm62_vm0, %v53_v25  ;;  %2590 = vmatpush1.bf16.msra.mxu1 %v3210_v27  ;;  %v143_v53 = vrot.slane %v138_v47, %v142_v49  ;;  %v147_v62 = vrot.slane %v138_v47, %v146_v50 }
   0xd   :  { %2562 = vmatpush1.bf16.msra.mxu0 %v2553_v9  ;;  %217 = vmatprep.mubr.f32.mxu0 %v3064_v3 }
   0xe   :  { %2564 = vmatprep.subr.bf16.mxu0 %v2555_v10  ;;  %2866 = vset.pattern.permute.xlu0 %v3066_v36 }
   0xf   :  { %361 = vperm.xlu0 %2866, %v224_v26   ;;  %2592 = vmatprep.subr.bf16.mxu1 %v3233_v34 }
  0x10   :  { %2594 = vmatpush1.bf16.msra.mxu1 %v3235_v35 }
  0x11   :  { %2566 = vmatpush1.bf16.msra.mxu0 %v2557_v15  ;;  %2596 = vmatprep.subr.bf16.mxu1 %v3237_v37 }
  0x12   :  { %2568 = vmatprep.subr.bf16.mxu0 %v3177_v16 }
  0x13   :  { %365 = vperm.xlu0 %2866, %v3249_v40  }
  0x14   :  { %2416 = vmatmul.mubr.msk.f32.vlgmr.msra.gmra.mrb[2].mxu0 %vm62_vm0, %v137_v41  ;;  %2598 = vmatpush1.bf16.msra.mxu1 %v3257_v42 }
  0x15   :  { %2570 = vmatpush1.bf16.msra.mxu0 %v3188_v20  ;;  %620 = vmatprep.mubr.f32.mxu0 %v3064_v3 }
  0x16   :  { %2572 = vmatprep.subr.bf16.mxu0 %v3193_v22  ;;  %2616 = vmatprep.subr.bf16.mxu1 %v3177_v16 }
  0x19   :  { %2574 = vmatpush1.bf16.msra.mxu0 %v3210_v27 }
  0x1a   :  { %2576 = vmatprep.subr.bf16.mxu0 %v3233_v34 }
  0x1d   :  { %2578 = vmatpush1.bf16.msra.mxu0 %v3235_v35 }
  0x1e   :  { %2580 = vmatprep.subr.bf16.mxu0 %v3237_v37 }
  0x21   :  { %2582 = vmatpush1.bf16.msra.mxu0 %v3257_v42 }
  0x22   :  { %2600 = vmatprep.subr.bf16.mxu0 %v3177_v16 }
  0x24   :  { %621 = vmatmul.mubr.f32.vlgmr.msra.gmra.mrb[4].mxu0 %v3064_v3 }
  0x25   :  { %2602 = vmatpush1.bf16.msra.mxu0 %v3188_v20  ;;  %820 = vmatprep.mubr.f32.mxu0 %v3064_v3 }
  0x26   :  { %2604 = vmatprep.subr.bf16.mxu0 %v3193_v22 }
  0x29   :  { %2606 = vmatpush1.bf16.msra.mxu0 %v3210_v27 }
  0x2a   :  { %2608 = vmatprep.subr.bf16.mxu0 %v3233_v34 }
  0x2d   :  { %2610 = vmatpush1.bf16.msra.mxu0 %v3235_v35 }
  0x2e   :  { %2612 = vmatprep.subr.bf16.mxu0 %v3237_v37 }
  0x31   :  { %2614 = vmatpush1.bf16.msra.mxu0 %v3257_v42 }
  0x32   :  { %2632 = vmatprep.subr.bf16.mxu0 %v3177_v16 }
  0x87   :  { %v243_v52 = vpop.permute.xlu0 %242 }
  0x8e   :  { %v362_v57 = vpop.permute.xlu0 %361 }
  0x92   :  { %v366_v36 = vpop.permute.xlu0 %365 }
  0xdf   :  { %v132_v43 = vpop.f32.mrb[0].mxu0 }
  0xe0   :  { %v134_v45 = vpop.f32.mrb[1].mxu0  ;;  %v3285_v54 = vrot.slane %v132_v43, %v142_v49  ;;  %v3287_v55 = vrot.slane %v132_v43, %v146_v50 }
  0xe1   :  { %v3294_v1 = vrot.slane %v134_v45, %v142_v49  ;;  %v3296_v2 = vrot.slane %v134_v45, %v146_v50 }
  0xe2   :  { %v328_v58 = vmul.f32 %v3285_v54, %v243_v52  ;;  %v432_v59 = vmul.f32 %v3287_v55, %v362_v57  ;;  %v434_v39 = vmul.f32 %v3287_v55, %v366_v36 }
  0xe3   :  { %v329_v8 = vmul.f32 %v3294_v1, %v243_v52  ;;  %v433_v9 = vmul.f32 %v3296_v2, %v362_v57 }
  0xe4   :  { %v464_v61 = vadd.f32 %v432_v59, %v328_v58  ;;  %v226_v59 = vld [vmem:[%s3716_s0 + $0x10] sm:$0xff] }
  0xe5   :  { %v465_v11 = vadd.f32 %v433_v9, %v329_v8 }
  0xe7   :  { %v219_v48 = vpop.f32.mrb[2].mxu0 }
  0xe8   :  { %v221_v51 = vpop.f32.mrb[3].mxu0  ;;  %v220_v56 = vadd.f32 %v219_v48, %v143_v53  ;;  %v435_v48 = vmul.f32 %v3296_v2, %v366_v36 }
  0xe9   :  { %v222_v6 = vadd.f32 %v221_v51, %v147_v62 }
  0xea   :  { %v3291_v60 = vrot.slane %v220_v56, %v142_v49 }
  0xeb   :  { %v3300_v10 = vrot.slane %v222_v6, %v142_v49 }
  0xec   :  { %v504_v63 = vadd.f32 %v3291_v60, %v464_v61 }
  0xed   :  { %v505_v12 = vadd.f32 %v3300_v10, %v465_v11 }
  0xf7   :  { %v622_v0 = vpop.f32.mrb[4].mxu0 }
  0xf8   :  { %v627_v4 = vadd.f32 %v622_v0, %v504_v63  ;;  %v624_v5 = vpop.f32.mrb[5].mxu0 }
  0xf9   :  { %v628_v13 = vadd.f32 %v624_v5, %v505_v12 }
  0xfa   :  { %v2417_v7 = vmul.f32 -1.442695, %v627_v4 }
  0xfb   :  { %v2418_v21 = vmul.f32 -1.442695, %v628_v13 }
  0xfc   :  { %2868 = vpow2.f32 %v2417_v7 }
  0xfd   :  { %2870 = vtanh.f32 %v628_v13 }
 0x106   :  { %v2869_v14 = vpop.eup %2868 }
 0x107   :  { %v632_v15 = vadd.f32 1.0, %v2869_v14  ;;  %v2871_v17 = vpop.eup %2870 }
 0x109   :  { %2872 = vrcp.f32 %v632_v15 }
 0x10a   :  { %2874 = vpow2.f32 %v2418_v21 }
 0x113   :  { %v2873_v18 = vpop.eup %2872 }
 0x114   :  { %v643_v19 = vmul.f32 %v2873_v18, %v2871_v17  ;;  %v2875_v23 = vpop.eup %2874  ;;  %v642_v25 = vmul.f32 0.0, %v2873_v18 }
 0x115   :  { %v639_v24 = vadd.f32 1.0, %v2875_v23 }
 0x116   :  { %645 = vrot.lane.b32.xlu1 %v643_v19, %s3067_s5 }
 0x117   :  { %2876 = vrcp.f32 %v639_v24 }
 0x121   :  { %v2877_v29 = vpop.eup %2876 }
 0x188   :  { %v646_v26 = vpop.permute.xlu1 %645 }
 0x189   :  { %v648_v28 = vadd.f32 %v646_v26, %v642_v25 }
 0x18b   :  { %2878 = vtanh.f32 %v648_v28 }
 0x195   :  { %v2879_v30 = vpop.eup %2878 }
 0x196   :  { %v650_v31 = vmul.f32 %v2879_v30, %v2877_v29 }
 0x198   :  { %652 = vrot.lane.b32.xlu1 %v650_v31, %s3067_s5 }
 0x19c   :  { %247 = vperm.xlu1 %2867, %v3249_v40  }
 0x20a   :  { %v653_v32 = vpop.permute.xlu1 %652 }
 0x20b   :  { %2419 = vmatmul.mubr.msk.f32.vlgmr.msra.gmra.mrb[0].mxu1 %vm552_vm1, %v653_v32 }
 0x20c   :  { %2618 = vmatpush1.bf16.msra.mxu1 %v3188_v20  ;;  %920 = vmatprep.mubr.f32.mxu1 %v3064_v3 }
 0x20d   :  { %2620 = vmatprep.subr.bf16.mxu1 %v3193_v22 }
 0x210   :  { %2622 = vmatpush1.bf16.msra.mxu1 %v3210_v27 }
 0x211   :  { %2624 = vmatprep.subr.bf16.mxu1 %v3233_v34 }
 0x214   :  { %2626 = vmatpush1.bf16.msra.mxu1 %v3235_v35 }
 0x215   :  { %2628 = vmatprep.subr.bf16.mxu1 %v3237_v37 }
 0x218   :  { %2630 = vmatpush1.bf16.msra.mxu1 %v3257_v42 }
 0x219   :  { %2648 = vmatprep.subr.bf16.mxu1 %v3177_v16 }
 0x21b   :  { %v248_v33 = vpop.permute.xlu1 %247 }
 0x21c   :  { %v330_v38 = vmul.f32 %v3285_v54, %v248_v33  ;;  %v331_v46 = vmul.f32 %v3294_v1, %v248_v33 }
 0x21e   :  { %v466_v40 = vadd.f32 %v434_v39, %v330_v38  ;;  %v467_v49 = vadd.f32 %v435_v48, %v331_v46  ;;  %v227_v38 = vld [vmem:[%s3716_s0 + $0x18] sm:$0xff] }
 0x220   :  { %v506_v41 = vadd.f32 %v3291_v60, %v466_v40  ;;  %v507_v50 = vadd.f32 %v3300_v10, %v467_v49 }
 0x2de   :  { %v722_v43 = vpop.f32.mrb[0].mxu1 }
 0x2df   :  { %v727_v44 = vadd.f32 %v722_v43, %v506_v41  ;;  %v724_v45 = vpop.f32.mrb[1].mxu1 }
 0x2e0   :  { %v728_v51 = vadd.f32 %v724_v45, %v507_v50 }
 0x2e1   :  { %v2420_v47 = vmul.f32 -1.442695, %v727_v44 }
 0x2e2   :  { %v2421_v61 = vmul.f32 -1.442695, %v728_v51 }
 0x2e3   :  { %2880 = vpow2.f32 %v2420_v47 }
 0x2e4   :  { %2882 = vtanh.f32 %v728_v51 }
 0x2ed   :  { %v2881_v52 = vpop.eup %2880 }
 0x2ee   :  { %v732_v53 = vadd.f32 1.0, %v2881_v52  ;;  %v2883_v56 = vpop.eup %2882 }
 0x2f0   :  { %2884 = vrcp.f32 %v732_v53 }
 0x2f1   :  { %2886 = vpow2.f32 %v2421_v61 }
 0x2fa   :  { %v2885_v57 = vpop.eup %2884 }
 0x2fb   :  { %v743_v58 = vmul.f32 %v2885_v57, %v2883_v56  ;;  %v2887_v62 = vpop.eup %2886  ;;  %v742_v0 = vmul.f32 %v2885_v57, %v648_v28 }
 0x2fc   :  { %v739_v63 = vadd.f32 1.0, %v2887_v62 }
 0x2fd   :  { %745 = vrot.lane.b32.xlu1 %v743_v58, %s3067_s5 }
 0x2fe   :  { %2888 = vrcp.f32 %v739_v63 }
 0x301   :  { %252 = vperm.xlu1 %2867, %v226_v59  }
 0x308   :  { %v2889_v6 = vpop.eup %2888 }
 0x36f   :  { %v746_v4 = vpop.permute.xlu1 %745 }
 0x370   :  { %v748_v5 = vadd.f32 %v746_v4, %v742_v0 }
 0x372   :  { %2890 = vtanh.f32 %v748_v5 }
 0x37c   :  { %v2891_v7 = vpop.eup %2890 }
 0x37d   :  { %v750_v8 = vmul.f32 %v2891_v7, %v2889_v6 }
 0x37f   :  { %752 = vrot.lane.b32.xlu0 %v750_v8, %s3067_s5 }
 0x380   :  { %v253_v12 = vpop.permute.xlu1 %252 }
 0x381   :  { %v332_v14 = vmul.f32 %v3285_v54, %v253_v12  ;;  %v333_v25 = vmul.f32 %v3294_v1, %v253_v12 }
 0x383   :  { %369 = vperm.xlu0 %2866, %v226_v59  }
 0x3f1   :  { %v753_v9 = vpop.permute.xlu0 %752 }
 0x3f2   :  { %2422 = vmatmul.mubr.msk.f32.vlgmr.msra.gmra.mrb[6].mxu0 %vm552_vm1, %v753_v9 }
 0x3f3   :  { %2634 = vmatpush1.bf16.msra.mxu0 %v3188_v20  ;;  %1020 = vmatprep.mubr.f32.mxu0 %v3064_v3 }
 0x3f4   :  { %2636 = vmatprep.subr.bf16.mxu0 %v3193_v22 }
 0x3f7   :  { %2638 = vmatpush1.bf16.msra.mxu0 %v3210_v27 }
 0x3f8   :  { %2640 = vmatprep.subr.bf16.mxu0 %v3233_v34 }
 0x3fb   :  { %2642 = vmatpush1.bf16.msra.mxu0 %v3235_v35 }
 0x3fc   :  { %2644 = vmatprep.subr.bf16.mxu0 %v3237_v37 }
 0x3ff   :  { %2646 = vmatpush1.bf16.msra.mxu0 %v3257_v42 }
 0x400   :  { %2664 = vmatprep.subr.bf16.mxu0 %v3177_v16 }
 0x402   :  { %v370_v11 = vpop.permute.xlu0 %369 }
 0x403   :  { %v436_v13 = vmul.f32 %v3287_v55, %v370_v11  ;;  %v437_v23 = vmul.f32 %v3296_v2, %v370_v11 }
 0x405   :  { %v468_v15 = vadd.f32 %v436_v13, %v332_v14  ;;  %v469_v26 = vadd.f32 %v437_v23, %v333_v25  ;;  %v228_v13 = vld [vmem:[%s3716_s0 + $0x20] sm:$0xff] }
 0x407   :  { %v508_v17 = vadd.f32 %v3291_v60, %v468_v15  ;;  %v509_v28 = vadd.f32 %v3300_v10, %v469_v26 }
 0x4c5   :  { %v822_v18 = vpop.f32.mrb[6].mxu0 }
 0x4c6   :  { %v827_v19 = vadd.f32 %v822_v18, %v508_v17  ;;  %v824_v21 = vpop.f32.mrb[7].mxu0 }
 0x4c7   :  { %v828_v29 = vadd.f32 %v824_v21, %v509_v28 }
 0x4c8   :  { %v2423_v24 = vmul.f32 -1.442695, %v827_v19 }
 0x4c9   :  { %v2424_v39 = vmul.f32 -1.442695, %v828_v29 }
 0x4ca   :  { %2892 = vpow2.f32 %v2423_v24 }
 0x4cb   :  { %2894 = vtanh.f32 %v828_v29 }
 0x4d4   :  { %v2893_v30 = vpop.eup %2892 }
 0x4d5   :  { %v832_v31 = vadd.f32 1.0, %v2893_v30  ;;  %v2895_v32 = vpop.eup %2894 }
 0x4d7   :  { %2896 = vrcp.f32 %v832_v31 }
 0x4d8   :  { %2898 = vpow2.f32 %v2424_v39 }
 0x4e1   :  { %v2897_v33 = vpop.eup %2896 }
 0x4e2   :  { %v843_v36 = vmul.f32 %v2897_v33, %v2895_v32  ;;  %v2899_v40 = vpop.eup %2898  ;;  %v842_v43 = vmul.f32 %v2897_v33, %v748_v5 }
 0x4e3   :  { %v839_v41 = vadd.f32 1.0, %v2899_v40 }
 0x4e4   :  { %845 = vrot.lane.b32.xlu1 %v843_v36, %s3067_s5 }
 0x4e5   :  { %2900 = vrcp.f32 %v839_v41 }
 0x4e8   :  { %257 = vperm.xlu1 %2867, %v227_v38  }
 0x4ef   :  { %v2901_v46 = vpop.eup %2900 }
 0x556   :  { %v846_v44 = vpop.permute.xlu1 %845 }
 0x557   :  { %v848_v45 = vadd.f32 %v846_v44, %v842_v43 }
 0x559   :  { %2902 = vtanh.f32 %v848_v45 }
 0x563   :  { %v2903_v47 = vpop.eup %2902 }
 0x564   :  { %v850_v48 = vmul.f32 %v2903_v47, %v2901_v46 }
 0x566   :  { %852 = vrot.lane.b32.xlu0 %v850_v48, %s3067_s5 }
 0x567   :  { %v258_v51 = vpop.permute.xlu1 %257 }
 0x568   :  { %v334_v53 = vmul.f32 %v3285_v54, %v258_v51  ;;  %v335_v0 = vmul.f32 %v3294_v1, %v258_v51 }
 0x56a   :  { %373 = vperm.xlu0 %2866, %v227_v38  }
 0x5d8   :  { %v853_v49 = vpop.permute.xlu0 %852 }
 0x5d9   :  { %2425 = vmatmul.mubr.msk.f32.vlgmr.msra.gmra.mrb[2].mxu1 %vm552_vm1, %v853_v49 }
 0x5da   :  { %2650 = vmatpush1.bf16.msra.mxu1 %v3188_v20  ;;  %1120 = vmatprep.mubr.f32.mxu1 %v3064_v3 }
 0x5db   :  { %2652 = vmatprep.subr.bf16.mxu1 %v3193_v22 }
 0x5de   :  { %2654 = vmatpush1.bf16.msra.mxu1 %v3210_v27 }
 0x5df   :  { %2656 = vmatprep.subr.bf16.mxu1 %v3233_v34 }
 0x5e2   :  { %2658 = vmatpush1.bf16.msra.mxu1 %v3235_v35 }
 0x5e3   :  { %2660 = vmatprep.subr.bf16.mxu1 %v3237_v37 }
 0x5e6   :  { %2662 = vmatpush1.bf16.msra.mxu1 %v3257_v42 }
 0x5e7   :  { %2680 = vmatprep.subr.bf16.mxu1 %v3177_v16 }
 0x5e9   :  { %v374_v50 = vpop.permute.xlu0 %373 }
 0x5ea   :  { %v438_v52 = vmul.f32 %v3287_v55, %v374_v50  ;;  %v439_v62 = vmul.f32 %v3296_v2, %v374_v50 }
 0x5ec   :  { %v470_v56 = vadd.f32 %v438_v52, %v334_v53  ;;  %v471_v4 = vadd.f32 %v439_v62, %v335_v0  ;;  %v229_v52 = vld [vmem:[%s3716_s0 + $0x28] sm:$0xff] }
 0x5ee   :  { %v510_v57 = vadd.f32 %v3291_v60, %v470_v56  ;;  %v511_v5 = vadd.f32 %v3300_v10, %v471_v4 }
 0x6ac   :  { %v922_v58 = vpop.f32.mrb[2].mxu1 }
 0x6ad   :  { %v927_v59 = vadd.f32 %v922_v58, %v510_v57  ;;  %v924_v61 = vpop.f32.mrb[3].mxu1 }
 0x6ae   :  { %v928_v6 = vadd.f32 %v924_v61, %v511_v5 }
 0x6af   :  { %v2426_v63 = vmul.f32 -1.442695, %v927_v59 }
 0x6b0   :  { %v2427_v14 = vmul.f32 -1.442695, %v928_v6 }
 0x6b1   :  { %2904 = vpow2.f32 %v2426_v63 }
 0x6b2   :  { %2906 = vtanh.f32 %v928_v6 }
 0x6bb   :  { %v2905_v7 = vpop.eup %2904 }
 0x6bc   :  { %v932_v8 = vadd.f32 1.0, %v2905_v7  ;;  %v2907_v9 = vpop.eup %2906 }
 0x6be   :  { %2908 = vrcp.f32 %v932_v8 }
 0x6bf   :  { %2910 = vpow2.f32 %v2427_v14 }
 0x6c8   :  { %v2909_v11 = vpop.eup %2908 }
 0x6c9   :  { %v943_v12 = vmul.f32 %v2909_v11, %v2907_v9  ;;  %v2911_v15 = vpop.eup %2910  ;;  %v942_v18 = vmul.f32 %v2909_v11, %v848_v45 }
 0x6ca   :  { %v939_v17 = vadd.f32 1.0, %v2911_v15 }
 0x6cb   :  { %945 = vrot.lane.b32.xlu1 %v943_v12, %s3067_s5 }
 0x6cc   :  { %2912 = vrcp.f32 %v939_v17 }
 0x6cf   :  { %262 = vperm.xlu1 %2867, %v228_v13  }
 0x6d6   :  { %v2913_v23 = vpop.eup %2912 }
 0x73d   :  { %v946_v19 = vpop.permute.xlu1 %945 }
 0x73e   :  { %v948_v21 = vadd.f32 %v946_v19, %v942_v18 }
 0x740   :  { %2914 = vtanh.f32 %v948_v21 }
 0x74a   :  { %v2915_v24 = vpop.eup %2914 }
 0x74b   :  { %v950_v25 = vmul.f32 %v2915_v24, %v2913_v23 }
 0x74d   :  { %952 = vrot.lane.b32.xlu0 %v950_v25, %s3067_s5 }
 0x74e   :  { %v263_v29 = vpop.permute.xlu1 %262 }
 0x74f   :  { %v336_v31 = vmul.f32 %v3285_v54, %v263_v29  ;;  %v337_v43 = vmul.f32 %v3294_v1, %v263_v29 }
 0x751   :  { %377 = vperm.xlu0 %2866, %v228_v13  }
 0x7bf   :  { %v953_v26 = vpop.permute.xlu0 %952 }
 0x7c0   :  { %2428 = vmatmul.mubr.msk.f32.vlgmr.msra.gmra.mrb[8].mxu0 %vm552_vm1, %v953_v26 }
 0x7c1   :  { %2666 = vmatpush1.bf16.msra.mxu0 %v3188_v20  ;;  %1220 = vmatprep.mubr.f32.mxu0 %v3064_v3 }
 0x7c2   :  { %2668 = vmatprep.subr.bf16.mxu0 %v3193_v22 }
 0x7c5   :  { %2670 = vmatpush1.bf16.msra.mxu0 %v3210_v27 }
 0x7c6   :  { %2672 = vmatprep.subr.bf16.mxu0 %v3233_v34 }
 0x7c9   :  { %2674 = vmatpush1.bf16.msra.mxu0 %v3235_v35 }
 0x7ca   :  { %2676 = vmatprep.subr.bf16.mxu0 %v3237_v37 }
 0x7cd   :  { %2678 = vmatpush1.bf16.msra.mxu0 %v3257_v42 }
 0x7ce   :  { %2696 = vmatprep.subr.bf16.mxu0 %v3177_v16 }
 0x7d0   :  { %v378_v28 = vpop.permute.xlu0 %377 }
 0x7d1   :  { %v440_v30 = vmul.f32 %v3287_v55, %v378_v28  ;;  %v441_v40 = vmul.f32 %v3296_v2, %v378_v28 }
 0x7d3   :  { %v472_v32 = vadd.f32 %v440_v30, %v336_v31  ;;  %v473_v44 = vadd.f32 %v441_v40, %v337_v43  ;;  %v230_v30 = vld [vmem:[%s3716_s0 + $0x30] sm:$0xff] }
 0x7d5   :  { %v512_v33 = vadd.f32 %v3291_v60, %v472_v32  ;;  %v513_v45 = vadd.f32 %v3300_v10, %v473_v44 }
 0x893   :  { %v1022_v36 = vpop.f32.mrb[8].mxu0 }
 0x894   :  { %v1027_v38 = vadd.f32 %v1022_v36, %v512_v33  ;;  %v1024_v39 = vpop.f32.mrb[9].mxu0 }
 0x895   :  { %v1028_v46 = vadd.f32 %v1024_v39, %v513_v45 }
 0x896   :  { %v2429_v41 = vmul.f32 -1.442695, %v1027_v38 }
 0x897   :  { %v2430_v53 = vmul.f32 -1.442695, %v1028_v46 }
 0x898   :  { %2916 = vpow2.f32 %v2429_v41 }
 0x899   :  { %2918 = vtanh.f32 %v1028_v46 }
 0x8a2   :  { %v2917_v47 = vpop.eup %2916 }
 0x8a3   :  { %v1032_v48 = vadd.f32 1.0, %v2917_v47  ;;  %v2919_v49 = vpop.eup %2918 }
 0x8a5   :  { %2920 = vrcp.f32 %v1032_v48 }
 0x8a6   :  { %2922 = vpow2.f32 %v2430_v53 }
 0x8af   :  { %v2921_v50 = vpop.eup %2920 }
 0x8b0   :  { %v1043_v51 = vmul.f32 %v2921_v50, %v2919_v49  ;;  %v2923_v56 = vpop.eup %2922  ;;  %v1042_v58 = vmul.f32 %v2921_v50, %v948_v21 }
 0x8b1   :  { %v1039_v57 = vadd.f32 1.0, %v2923_v56 }
 0x8b2   :  { %1045 = vrot.lane.b32.xlu1 %v1043_v51, %s3067_s5 }
 0x8b3   :  { %2924 = vrcp.f32 %v1039_v57 }
 0x8b6   :  { %267 = vperm.xlu1 %2867, %v229_v52  }
 0x8bd   :  { %v2925_v62 = vpop.eup %2924 }
 0x924   :  { %v1046_v59 = vpop.permute.xlu1 %1045 }
 0x925   :  { %v1048_v61 = vadd.f32 %v1046_v59, %v1042_v58 }
 0x927   :  { %2926 = vtanh.f32 %v1048_v61 }
 0x931   :  { %v2927_v63 = vpop.eup %2926 }
 0x932   :  { %v1050_v0 = vmul.f32 %v2927_v63, %v2925_v62 }
 0x934   :  { %1052 = vrot.lane.b32.xlu0 %v1050_v0, %s3067_s5 }
 0x935   :  { %v268_v6 = vpop.permute.xlu1 %267 }
 0x936   :  { %v338_v8 = vmul.f32 %v3285_v54, %v268_v6  ;;  %v339_v18 = vmul.f32 %v3294_v1, %v268_v6 }
 0x938   :  { %381 = vperm.xlu0 %2866, %v229_v52  }
 0x9a6   :  { %v1053_v4 = vpop.permute.xlu0 %1052 }
 0x9a7   :  { %2431 = vmatmul.mubr.msk.f32.vlgmr.msra.gmra.mrb[4].mxu1 %vm552_vm1, %v1053_v4 }
 0x9a8   :  { %2682 = vmatpush1.bf16.msra.mxu1 %v3188_v20  ;;  %1320 = vmatprep.mubr.f32.mxu1 %v3064_v3 }
 0x9a9   :  { %2684 = vmatprep.subr.bf16.mxu1 %v3193_v22 }
 0x9ac   :  { %2686 = vmatpush1.bf16.msra.mxu1 %v3210_v27 }
 0x9ad   :  { %2688 = vmatprep.subr.bf16.mxu1 %v3233_v34 }
 0x9b0   :  { %2690 = vmatpush1.bf16.msra.mxu1 %v3235_v35 }
 0x9b1   :  { %2692 = vmatprep.subr.bf16.mxu1 %v3237_v37 }
 0x9b4   :  { %2694 = vmatpush1.bf16.msra.mxu1 %v3257_v42 }
 0x9b5   :  { %2712 = vmatprep.subr.bf16.mxu1 %v3177_v16 }
 0x9b7   :  { %v382_v5 = vpop.permute.xlu0 %381 }
 0x9b8   :  { %v442_v7 = vmul.f32 %v3287_v55, %v382_v5  ;;  %v443_v15 = vmul.f32 %v3296_v2, %v382_v5 }
 0x9ba   :  { %v474_v9 = vadd.f32 %v442_v7, %v338_v8  ;;  %v475_v19 = vadd.f32 %v443_v15, %v339_v18  ;;  %v231_v7 = vld [vmem:[%s3716_s0 + $0x38] sm:$0xff] }
 0x9bc   :  { %v514_v11 = vadd.f32 %v3291_v60, %v474_v9  ;;  %v515_v21 = vadd.f32 %v3300_v10, %v475_v19 }
 0xa7a   :  { %v1122_v12 = vpop.f32.mrb[4].mxu1 }
 0xa7b   :  { %v1127_v13 = vadd.f32 %v1122_v12, %v514_v11  ;;  %v1124_v14 = vpop.f32.mrb[5].mxu1 }
 0xa7c   :  { %v1128_v23 = vadd.f32 %v1124_v14, %v515_v21 }
 0xa7d   :  { %v2432_v17 = vmul.f32 -1.442695, %v1127_v13 }
 0xa7e   :  { %v2433_v31 = vmul.f32 -1.442695, %v1128_v23 }
 0xa7f   :  { %2928 = vpow2.f32 %v2432_v17 }
 0xa80   :  { %2930 = vtanh.f32 %v1128_v23 }
 0xa89   :  { %v2929_v24 = vpop.eup %2928 }
 0xa8a   :  { %v1132_v25 = vadd.f32 1.0, %v2929_v24  ;;  %v2931_v26 = vpop.eup %2930 }
 0xa8c   :  { %2932 = vrcp.f32 %v1132_v25 }
 0xa8d   :  { %2934 = vpow2.f32 %v2433_v31 }
 0xa96   :  { %v2933_v28 = vpop.eup %2932 }
 0xa97   :  { %v1143_v29 = vmul.f32 %v2933_v28, %v2931_v26  ;;  %v2935_v32 = vpop.eup %2934  ;;  %v1142_v36 = vmul.f32 %v2933_v28, %v1048_v61 }
 0xa98   :  { %v1139_v33 = vadd.f32 1.0, %v2935_v32 }
 0xa99   :  { %1145 = vrot.lane.b32.xlu1 %v1143_v29, %s3067_s5 }
 0xa9a   :  { %2936 = vrcp.f32 %v1139_v33 }
 0xa9d   :  { %272 = vperm.xlu1 %2867, %v230_v30  }
 0xaa4   :  { %v2937_v40 = vpop.eup %2936 }
 0xb0b   :  { %v1146_v38 = vpop.permute.xlu1 %1145 }
 0xb0c   :  { %v1148_v39 = vadd.f32 %v1146_v38, %v1142_v36 }
 0xb0e   :  { %2938 = vtanh.f32 %v1148_v39 }
 0xb18   :  { %v2939_v41 = vpop.eup %2938 }
 0xb19   :  { %v1150_v43 = vmul.f32 %v2939_v41, %v2937_v40 }
 0xb1b   :  { %1152 = vrot.lane.b32.xlu0 %v1150_v43, %s3067_s5 }
 0xb1c   :  { %v273_v46 = vpop.permute.xlu1 %272 }
 0xb1d   :  { %v340_v48 = vmul.f32 %v3285_v54, %v273_v46  ;;  %v341_v58 = vmul.f32 %v3294_v1, %v273_v46 }
 0xb1f   :  { %385 = vperm.xlu0 %2866, %v230_v30  }
 0xb8d   :  { %v1153_v44 = vpop.permute.xlu0 %1152 }
 0xb8e   :  { %2434 = vmatmul.mubr.msk.f32.vlgmr.msra.gmra.mrb[10].mxu0 %vm552_vm1, %v1153_v44 }
 0xb8f   :  { %2698 = vmatpush1.bf16.msra.mxu0 %v3188_v20  ;;  %1420 = vmatprep.mubr.f32.mxu0 %v3064_v3 }
 0xb90   :  { %2700 = vmatprep.subr.bf16.mxu0 %v3193_v22 }
 0xb93   :  { %2702 = vmatpush1.bf16.msra.mxu0 %v3210_v27 }
 0xb94   :  { %2704 = vmatprep.subr.bf16.mxu0 %v3233_v34 }
 0xb97   :  { %2706 = vmatpush1.bf16.msra.mxu0 %v3235_v35 }
 0xb98   :  { %2708 = vmatprep.subr.bf16.mxu0 %v3237_v37 }
 0xb9b   :  { %2710 = vmatpush1.bf16.msra.mxu0 %v3257_v42 }
 0xb9c   :  { %2728 = vmatprep.subr.bf16.mxu0 %v3177_v16 }
 0xb9e   :  { %v386_v45 = vpop.permute.xlu0 %385 }
 0xb9f   :  { %v444_v47 = vmul.f32 %v3287_v55, %v386_v45  ;;  %v445_v56 = vmul.f32 %v3296_v2, %v386_v45 }
 0xba1   :  { %v476_v49 = vadd.f32 %v444_v47, %v340_v48  ;;  %v477_v59 = vadd.f32 %v445_v56, %v341_v58  ;;  %v232_v47 = vld [vmem:[%s3716_s0 + $0x40] sm:$0xff] }
 0xba3   :  { %v516_v50 = vadd.f32 %v3291_v60, %v476_v49  ;;  %v517_v61 = vadd.f32 %v3300_v10, %v477_v59 }
 0xc61   :  { %v1222_v51 = vpop.f32.mrb[10].mxu0 }
 0xc62   :  { %v1227_v52 = vadd.f32 %v1222_v51, %v516_v50  ;;  %v1224_v53 = vpop.f32.mrb[11].mxu0 }
 0xc63   :  { %v1228_v62 = vadd.f32 %v1224_v53, %v517_v61 }
 0xc64   :  { %v2435_v57 = vmul.f32 -1.442695, %v1227_v52 }
 0xc65   :  { %v2436_v8 = vmul.f32 -1.442695, %v1228_v62 }
 0xc66   :  { %2940 = vpow2.f32 %v2435_v57 }
 0xc67   :  { %2942 = vtanh.f32 %v1228_v62 }
 0xc70   :  { %v2941_v63 = vpop.eup %2940 }
 0xc71   :  { %v1232_v0 = vadd.f32 1.0, %v2941_v63  ;;  %v2943_v4 = vpop.eup %2942 }
 0xc73   :  { %2944 = vrcp.f32 %v1232_v0 }
 0xc74   :  { %2946 = vpow2.f32 %v2436_v8 }
 0xc7d   :  { %v2945_v5 = vpop.eup %2944 }
 0xc7e   :  { %v1243_v6 = vmul.f32 %v2945_v5, %v2943_v4  ;;  %v2947_v9 = vpop.eup %2946  ;;  %v1242_v12 = vmul.f32 %v2945_v5, %v1148_v39 }
 0xc7f   :  { %v1239_v11 = vadd.f32 1.0, %v2947_v9 }
 0xc80   :  { %1245 = vrot.lane.b32.xlu1 %v1243_v6, %s3067_s5 }
 0xc81   :  { %2948 = vrcp.f32 %v1239_v11 }
 0xc84   :  { %277 = vperm.xlu1 %2867, %v231_v7  }
 0xc8b   :  { %v2949_v15 = vpop.eup %2948 }
 0xcf2   :  { %v1246_v13 = vpop.permute.xlu1 %1245 }
 0xcf3   :  { %v1248_v14 = vadd.f32 %v1246_v13, %v1242_v12 }
 0xcf5   :  { %2950 = vtanh.f32 %v1248_v14 }
 0xcff   :  { %v2951_v17 = vpop.eup %2950 }
 0xd00   :  { %v1250_v18 = vmul.f32 %v2951_v17, %v2949_v15 }
 0xd02   :  { %1252 = vrot.lane.b32.xlu0 %v1250_v18, %s3067_s5 }
 0xd03   :  { %v278_v23 = vpop.permute.xlu1 %277 }
 0xd04   :  { %v342_v25 = vmul.f32 %v3285_v54, %v278_v23  ;;  %v343_v36 = vmul.f32 %v3294_v1, %v278_v23 }
 0xd06   :  { %389 = vperm.xlu0 %2866, %v231_v7  }
 0xd74   :  { %v1253_v19 = vpop.permute.xlu0 %1252 }
 0xd75   :  { %2437 = vmatmul.mubr.msk.f32.vlgmr.msra.gmra.mrb[6].mxu1 %vm552_vm1, %v1253_v19 }
 0xd76   :  { %2714 = vmatpush1.bf16.msra.mxu1 %v3188_v20  ;;  %1520 = vmatprep.mubr.f32.mxu1 %v3064_v3 }
 0xd77   :  { %2716 = vmatprep.subr.bf16.mxu1 %v3193_v22 }
 0xd7a   :  { %2718 = vmatpush1.bf16.msra.mxu1 %v3210_v27 }
 0xd7b   :  { %2720 = vmatprep.subr.bf16.mxu1 %v3233_v34 }
 0xd7e   :  { %2722 = vmatpush1.bf16.msra.mxu1 %v3235_v35 }
 0xd7f   :  { %2724 = vmatprep.subr.bf16.mxu1 %v3237_v37 }
 0xd82   :  { %2726 = vmatpush1.bf16.msra.mxu1 %v3257_v42 }
 0xd83   :  { %2744 = vmatprep.subr.bf16.mxu1 %v3177_v16 }
 0xd85   :  { %v390_v21 = vpop.permute.xlu0 %389 }
 0xd86   :  { %v446_v24 = vmul.f32 %v3287_v55, %v390_v21  ;;  %v447_v32 = vmul.f32 %v3296_v2, %v390_v21 }
 0xd88   :  { %v478_v26 = vadd.f32 %v446_v24, %v342_v25  ;;  %v479_v38 = vadd.f32 %v447_v32, %v343_v36  ;;  %v233_v24 = vld [vmem:[%s3716_s0 + $0x48] sm:$0xff] }
 0xd8a   :  { %v518_v28 = vadd.f32 %v3291_v60, %v478_v26  ;;  %v519_v39 = vadd.f32 %v3300_v10, %v479_v38 }
 0xe48   :  { %v1322_v29 = vpop.f32.mrb[6].mxu1 }
 0xe49   :  { %v1327_v30 = vadd.f32 %v1322_v29, %v518_v28  ;;  %v1324_v31 = vpop.f32.mrb[7].mxu1 }
 0xe4a   :  { %v1328_v40 = vadd.f32 %v1324_v31, %v519_v39 }
 0xe4b   :  { %v2438_v33 = vmul.f32 -1.442695, %v1327_v30 }
 0xe4c   :  { %v2439_v48 = vmul.f32 -1.442695, %v1328_v40 }
 0xe4d   :  { %2952 = vpow2.f32 %v2438_v33 }
 0xe4e   :  { %2954 = vtanh.f32 %v1328_v40 }
 0xe57   :  { %v2953_v41 = vpop.eup %2952 }
 0xe58   :  { %v1332_v43 = vadd.f32 1.0, %v2953_v41  ;;  %v2955_v44 = vpop.eup %2954 }
 0xe5a   :  { %2956 = vrcp.f32 %v1332_v43 }
 0xe5b   :  { %2958 = vpow2.f32 %v2439_v48 }
 0xe64   :  { %v2957_v45 = vpop.eup %2956 }
 0xe65   :  { %v1343_v46 = vmul.f32 %v2957_v45, %v2955_v44  ;;  %v2959_v49 = vpop.eup %2958  ;;  %v1342_v51 = vmul.f32 %v2957_v45, %v1248_v14 }
 0xe66   :  { %v1339_v50 = vadd.f32 1.0, %v2959_v49 }
 0xe67   :  { %1345 = vrot.lane.b32.xlu1 %v1343_v46, %s3067_s5 }
 0xe68   :  { %2960 = vrcp.f32 %v1339_v50 }
 0xe6b   :  { %282 = vperm.xlu1 %2867, %v232_v47  }
 0xe72   :  { %v2961_v56 = vpop.eup %2960 }
 0xed9   :  { %v1346_v52 = vpop.permute.xlu1 %1345 }
 0xeda   :  { %v1348_v53 = vadd.f32 %v1346_v52, %v1342_v51 }
 0xedc   :  { %2962 = vtanh.f32 %v1348_v53 }
 0xee6   :  { %v2963_v57 = vpop.eup %2962 }
 0xee7   :  { %v1350_v58 = vmul.f32 %v2963_v57, %v2961_v56 }
 0xee9   :  { %1352 = vrot.lane.b32.xlu0 %v1350_v58, %s3067_s5 }
 0xeea   :  { %v283_v62 = vpop.permute.xlu1 %282 }
 0xeeb   :  { %v344_v0 = vmul.f32 %v3285_v54, %v283_v62  ;;  %v345_v12 = vmul.f32 %v3294_v1, %v283_v62 }
 0xeed   :  { %393 = vperm.xlu0 %2866, %v232_v47  }
 0xf5b   :  { %v1353_v59 = vpop.permute.xlu0 %1352 }
 0xf5c   :  { %2440 = vmatmul.mubr.msk.f32.vlgmr.msra.gmra.mrb[12].mxu0 %vm552_vm1, %v1353_v59 }
 0xf5d   :  { %2730 = vmatpush1.bf16.msra.mxu0 %v3188_v20  ;;  %1620 = vmatprep.mubr.f32.mxu0 %v3064_v3 }
 0xf5e   :  { %2732 = vmatprep.subr.bf16.mxu0 %v3193_v22 }
 0xf61   :  { %2734 = vmatpush1.bf16.msra.mxu0 %v3210_v27 }
 0xf62   :  { %2736 = vmatprep.subr.bf16.mxu0 %v3233_v34 }
 0xf65   :  { %2738 = vmatpush1.bf16.msra.mxu0 %v3235_v35 }
 0xf66   :  { %2740 = vmatprep.subr.bf16.mxu0 %v3237_v37 }
 0xf69   :  { %2742 = vmatpush1.bf16.msra.mxu0 %v3257_v42 }
 0xf6a   :  { %2760 = vmatprep.subr.bf16.mxu0 %v3177_v16 }
 0xf6c   :  { %v394_v61 = vpop.permute.xlu0 %393 }
 0xf6d   :  { %v448_v63 = vmul.f32 %v3287_v55, %v394_v61  ;;  %v449_v9 = vmul.f32 %v3296_v2, %v394_v61 }
 0xf6f   :  { %v480_v4 = vadd.f32 %v448_v63, %v344_v0  ;;  %v481_v13 = vadd.f32 %v449_v9, %v345_v12  ;;  %v234_v63 = vld [vmem:[%s3716_s0 + $0x50] sm:$0xff] }
 0xf71   :  { %v520_v5 = vadd.f32 %v3291_v60, %v480_v4  ;;  %v521_v14 = vadd.f32 %v3300_v10, %v481_v13 }
0x102f   :  { %v1422_v6 = vpop.f32.mrb[12].mxu0 }
0x1030   :  { %v1427_v7 = vadd.f32 %v1422_v6, %v520_v5  ;;  %v1424_v8 = vpop.f32.mrb[13].mxu0 }
0x1031   :  { %v1428_v15 = vadd.f32 %v1424_v8, %v521_v14 }
0x1032   :  { %v2441_v11 = vmul.f32 -1.442695, %v1427_v7 }
0x1033   :  { %v2442_v25 = vmul.f32 -1.442695, %v1428_v15 }
0x1034   :  { %2964 = vpow2.f32 %v2441_v11 }
0x1035   :  { %2966 = vtanh.f32 %v1428_v15 }
0x103e   :  { %v2965_v17 = vpop.eup %2964 }
0x103f   :  { %v1432_v18 = vadd.f32 1.0, %v2965_v17  ;;  %v2967_v19 = vpop.eup %2966 }
0x1041   :  { %2968 = vrcp.f32 %v1432_v18 }
0x1042   :  { %2970 = vpow2.f32 %v2442_v25 }
0x104b   :  { %v2969_v21 = vpop.eup %2968 }
0x104c   :  { %v1443_v23 = vmul.f32 %v2969_v21, %v2967_v19  ;;  %v2971_v26 = vpop.eup %2970  ;;  %v1442_v29 = vmul.f32 %v2969_v21, %v1348_v53 }
0x104d   :  { %v1439_v28 = vadd.f32 1.0, %v2971_v26 }
0x104e   :  { %1445 = vrot.lane.b32.xlu1 %v1443_v23, %s3067_s5 }
0x104f   :  { %2972 = vrcp.f32 %v1439_v28 }
0x1052   :  { %287 = vperm.xlu1 %2867, %v233_v24  }
0x1059   :  { %v2973_v32 = vpop.eup %2972 }
0x10c0   :  { %v1446_v30 = vpop.permute.xlu1 %1445 }
0x10c1   :  { %v1448_v31 = vadd.f32 %v1446_v30, %v1442_v29 }
0x10c3   :  { %2974 = vtanh.f32 %v1448_v31 }
0x10cd   :  { %v2975_v33 = vpop.eup %2974 }
0x10ce   :  { %v1450_v36 = vmul.f32 %v2975_v33, %v2973_v32 }
0x10d0   :  { %1452 = vrot.lane.b32.xlu0 %v1450_v36, %s3067_s5 }
0x10d1   :  { %v288_v40 = vpop.permute.xlu1 %287 }
0x10d2   :  { %v346_v43 = vmul.f32 %v3285_v54, %v288_v40  ;;  %v347_v51 = vmul.f32 %v3294_v1, %v288_v40 }
0x10d4   :  { %397 = vperm.xlu0 %2866, %v233_v24  }
0x1142   :  { %v1453_v38 = vpop.permute.xlu0 %1452 }
0x1143   :  { %2443 = vmatmul.mubr.msk.f32.vlgmr.msra.gmra.mrb[8].mxu1 %vm552_vm1, %v1453_v38 }
0x1144   :  { %2746 = vmatpush1.bf16.msra.mxu1 %v3188_v20  ;;  %1720 = vmatprep.mubr.f32.mxu1 %v3064_v3 }
0x1145   :  { %2748 = vmatprep.subr.bf16.mxu1 %v3193_v22 }
0x1148   :  { %2750 = vmatpush1.bf16.msra.mxu1 %v3210_v27 }
0x1149   :  { %2752 = vmatprep.subr.bf16.mxu1 %v3233_v34 }
0x114c   :  { %2754 = vmatpush1.bf16.msra.mxu1 %v3235_v35 }
0x114d   :  { %2756 = vmatprep.subr.bf16.mxu1 %v3237_v37 }
0x1150   :  { %2758 = vmatpush1.bf16.msra.mxu1 %v3257_v42 }
0x1151   :  { %2776 = vmatprep.subr.bf16.mxu1 %v3177_v16 }
0x1153   :  { %v398_v39 = vpop.permute.xlu0 %397 }
0x1154   :  { %v450_v41 = vmul.f32 %v3287_v55, %v398_v39  ;;  %v451_v49 = vmul.f32 %v3296_v2, %v398_v39 }
0x1156   :  { %v482_v44 = vadd.f32 %v450_v41, %v346_v43  ;;  %v483_v52 = vadd.f32 %v451_v49, %v347_v51  ;;  %v235_v41 = vld [vmem:[%s3716_s0 + $0x58] sm:$0xff] }
0x1158   :  { %v522_v45 = vadd.f32 %v3291_v60, %v482_v44  ;;  %v523_v53 = vadd.f32 %v3300_v10, %v483_v52 }
0x1216   :  { %v1522_v46 = vpop.f32.mrb[8].mxu1 }
0x1217   :  { %v1527_v47 = vadd.f32 %v1522_v46, %v522_v45  ;;  %v1524_v48 = vpop.f32.mrb[9].mxu1 }
0x1218   :  { %v1528_v56 = vadd.f32 %v1524_v48, %v523_v53 }
0x1219   :  { %v2444_v50 = vmul.f32 -1.442695, %v1527_v47 }
0x121a   :  { %v2445_v0 = vmul.f32 -1.442695, %v1528_v56 }
0x121b   :  { %2976 = vpow2.f32 %v2444_v50 }
0x121c   :  { %2978 = vtanh.f32 %v1528_v56 }
0x1225   :  { %v2977_v57 = vpop.eup %2976 }
0x1226   :  { %v1532_v58 = vadd.f32 1.0, %v2977_v57  ;;  %v2979_v59 = vpop.eup %2978 }
0x1228   :  { %2980 = vrcp.f32 %v1532_v58 }
0x1229   :  { %2982 = vpow2.f32 %v2445_v0 }
0x1232   :  { %v2981_v61 = vpop.eup %2980 }
0x1233   :  { %v1543_v62 = vmul.f32 %v2981_v61, %v2979_v59  ;;  %v2983_v4 = vpop.eup %2982  ;;  %v1542_v6 = vmul.f32 %v2981_v61, %v1448_v31 }
0x1234   :  { %v1539_v5 = vadd.f32 1.0, %v2983_v4 }
0x1235   :  { %1545 = vrot.lane.b32.xlu1 %v1543_v62, %s3067_s5 }
0x1236   :  { %2984 = vrcp.f32 %v1539_v5 }
0x1239   :  { %292 = vperm.xlu1 %2867, %v234_v63  }
0x1240   :  { %v2985_v9 = vpop.eup %2984 }
0x12a7   :  { %v1546_v7 = vpop.permute.xlu1 %1545 }
0x12a8   :  { %v1548_v8 = vadd.f32 %v1546_v7, %v1542_v6 }
0x12aa   :  { %2986 = vtanh.f32 %v1548_v8 }
0x12b4   :  { %v2987_v11 = vpop.eup %2986 }
0x12b5   :  { %v1550_v12 = vmul.f32 %v2987_v11, %v2985_v9 }
0x12b7   :  { %1552 = vrot.lane.b32.xlu0 %v1550_v12, %s3067_s5 }
0x12b8   :  { %v293_v15 = vpop.permute.xlu1 %292 }
0x12b9   :  { %v348_v18 = vmul.f32 %v3285_v54, %v293_v15  ;;  %v349_v29 = vmul.f32 %v3294_v1, %v293_v15  ;;  %v236_v15 = vld [vmem:[%s3716_s0 + $0x60] sm:$0xff] }
0x12bb   :  { %401 = vperm.xlu0 %2866, %v234_v63  }
0x1329   :  { %v1553_v13 = vpop.permute.xlu0 %1552 }
0x132a   :  { %2446 = vmatmul.mubr.msk.f32.vlgmr.msra.gmra.mrb[14].mxu0 %vm552_vm1, %v1553_v13 }
0x132b   :  { %2762 = vmatpush1.bf16.msra.mxu0 %v3188_v20  ;;  %1820 = vmatprep.mubr.f32.mxu0 %v3064_v3 }
0x132c   :  { %2764 = vmatprep.subr.bf16.mxu0 %v3193_v22 }
0x132f   :  { %2766 = vmatpush1.bf16.msra.mxu0 %v3210_v27 }
0x1330   :  { %2768 = vmatprep.subr.bf16.mxu0 %v3233_v34 }
0x1333   :  { %2770 = vmatpush1.bf16.msra.mxu0 %v3235_v35 }
0x1334   :  { %2772 = vmatprep.subr.bf16.mxu0 %v3237_v37 }
0x1337   :  { %2774 = vmatpush1.bf16.msra.mxu0 %v3257_v42 }
0x1338   :  { %2792 = vmatprep.subr.bf16.mxu0 %v3177_v16 }
0x133a   :  { %v402_v14 = vpop.permute.xlu0 %401 }
0x133b   :  { %v452_v17 = vmul.f32 %v3287_v55, %v402_v14  ;;  %v453_v26 = vmul.f32 %v3296_v2, %v402_v14 }
0x133d   :  { %v484_v19 = vadd.f32 %v452_v17, %v348_v18  ;;  %v485_v30 = vadd.f32 %v453_v26, %v349_v29 }
0x133f   :  { %v524_v21 = vadd.f32 %v3291_v60, %v484_v19  ;;  %v525_v31 = vadd.f32 %v3300_v10, %v485_v30 }
0x13fd   :  { %v1622_v23 = vpop.f32.mrb[14].mxu0 }
0x13fe   :  { %v1627_v24 = vadd.f32 %v1622_v23, %v524_v21  ;;  %v1624_v25 = vpop.f32.mrb[15].mxu0 }
0x13ff   :  { %v1628_v32 = vadd.f32 %v1624_v25, %v525_v31 }
0x1400   :  { %v2447_v28 = vmul.f32 -1.442695, %v1627_v24 }
0x1401   :  { %v2448_v43 = vmul.f32 -1.442695, %v1628_v32 }
0x1402   :  { %2988 = vpow2.f32 %v2447_v28 }
0x1403   :  { %2990 = vtanh.f32 %v1628_v32 }
0x140c   :  { %v2989_v33 = vpop.eup %2988 }
0x140d   :  { %v1632_v36 = vadd.f32 1.0, %v2989_v33  ;;  %v2991_v38 = vpop.eup %2990 }
0x140f   :  { %2992 = vrcp.f32 %v1632_v36 }
0x1410   :  { %2994 = vpow2.f32 %v2448_v43 }
0x1419   :  { %v2993_v39 = vpop.eup %2992 }
0x141a   :  { %v1643_v40 = vmul.f32 %v2993_v39, %v2991_v38  ;;  %v2995_v44 = vpop.eup %2994  ;;  %v1642_v46 = vmul.f32 %v2993_v39, %v1548_v8 }
0x141b   :  { %v1639_v45 = vadd.f32 1.0, %v2995_v44 }
0x141c   :  { %1645 = vrot.lane.b32.xlu1 %v1643_v40, %s3067_s5 }
0x141d   :  { %2996 = vrcp.f32 %v1639_v45 }
0x1420   :  { %297 = vperm.xlu1 %2867, %v235_v41  }
0x1427   :  { %v2997_v49 = vpop.eup %2996 }
0x148e   :  { %v1646_v47 = vpop.permute.xlu1 %1645 }
0x148f   :  { %v1648_v48 = vadd.f32 %v1646_v47, %v1642_v46 }
0x1491   :  { %2998 = vtanh.f32 %v1648_v48 }
0x149b   :  { %v2999_v50 = vpop.eup %2998 }
0x149c   :  { %v1650_v51 = vmul.f32 %v2999_v50, %v2997_v49 }
0x149e   :  { %1652 = vrot.lane.b32.xlu0 %v1650_v51, %s3067_s5 }
0x149f   :  { %v298_v56 = vpop.permute.xlu1 %297 }
0x14a0   :  { %v350_v58 = vmul.f32 %v3285_v54, %v298_v56  ;;  %v351_v6 = vmul.f32 %v3294_v1, %v298_v56  ;;  %v237_v56 = vld [vmem:[%s3716_s0 + $0x68] sm:$0xff] }
0x14a2   :  { %405 = vperm.xlu0 %2866, %v235_v41  }
0x1510   :  { %v1653_v52 = vpop.permute.xlu0 %1652 }
0x1511   :  { %2449 = vmatmul.mubr.msk.f32.vlgmr.msra.gmra.mrb[10].mxu1 %vm552_vm1, %v1653_v52 }
0x1512   :  { %2778 = vmatpush1.bf16.msra.mxu1 %v3188_v20  ;;  %1920 = vmatprep.mubr.f32.mxu1 %v3064_v3 }
0x1513   :  { %2780 = vmatprep.subr.bf16.mxu1 %v3193_v22 }
0x1516   :  { %2782 = vmatpush1.bf16.msra.mxu1 %v3210_v27 }
0x1517   :  { %2784 = vmatprep.subr.bf16.mxu1 %v3233_v34 }
0x151a   :  { %2786 = vmatpush1.bf16.msra.mxu1 %v3235_v35 }
0x151b   :  { %2788 = vmatprep.subr.bf16.mxu1 %v3237_v37 }
0x151e   :  { %2790 = vmatpush1.bf16.msra.mxu1 %v3257_v42 }
0x151f   :  { %2808 = vmatprep.subr.bf16.mxu1 %v3177_v16 }
0x1521   :  { %v406_v53 = vpop.permute.xlu0 %405 }
0x1522   :  { %v454_v57 = vmul.f32 %v3287_v55, %v406_v53  ;;  %v455_v4 = vmul.f32 %v3296_v2, %v406_v53 }
0x1524   :  { %v486_v59 = vadd.f32 %v454_v57, %v350_v58  ;;  %v487_v7 = vadd.f32 %v455_v4, %v351_v6 }
0x1526   :  { %v526_v61 = vadd.f32 %v3291_v60, %v486_v59  ;;  %v527_v16 = vadd.f32 %v3300_v10, %v487_v7 }
0x15e4   :  { %v1722_v62 = vpop.f32.mrb[10].mxu1 }
0x15e5   :  { %v1727_v63 = vadd.f32 %v1722_v62, %v526_v61  ;;  %v1724_v0 = vpop.f32.mrb[11].mxu1 }
0x15e6   :  { %v1728_v8 = vadd.f32 %v1724_v0, %v527_v16 }
0x15e7   :  { %v2450_v5 = vmul.f32 -1.442695, %v1727_v63 }
0x15e8   :  { %v2451_v17 = vmul.f32 -1.442695, %v1728_v8 }
0x15e9   :  { %3000 = vpow2.f32 %v2450_v5 }
0x15ea   :  { %3002 = vtanh.f32 %v1728_v8 }
0x15f3   :  { %v3001_v9 = vpop.eup %3000 }
0x15f4   :  { %v1732_v11 = vadd.f32 1.0, %v3001_v9  ;;  %v3003_v12 = vpop.eup %3002 }
0x15f6   :  { %3004 = vrcp.f32 %v1732_v11 }
0x15f7   :  { %3006 = vpow2.f32 %v2451_v17 }
0x1600   :  { %v3005_v13 = vpop.eup %3004 }
0x1601   :  { %v1743_v14 = vmul.f32 %v3005_v13, %v3003_v12  ;;  %v3007_v18 = vpop.eup %3006  ;;  %v1742_v21 = vmul.f32 %v3005_v13, %v1648_v48 }
0x1602   :  { %v1739_v19 = vadd.f32 1.0, %v3007_v18 }
0x1603   :  { %1745 = vrot.lane.b32.xlu1 %v1743_v14, %s3067_s5 }
0x1604   :  { %3008 = vrcp.f32 %v1739_v19 }
0x1607   :  { %302 = vperm.xlu1 %2867, %v236_v15  }
0x160e   :  { %v3009_v25 = vpop.eup %3008 }
0x1675   :  { %v1746_v23 = vpop.permute.xlu1 %1745 }
0x1676   :  { %v1748_v24 = vadd.f32 %v1746_v23, %v1742_v21  ;;  %v238_v23 = vld [vmem:[%s3716_s0 + $0x70] sm:$0xff] }
0x1678   :  { %3010 = vtanh.f32 %v1748_v24 }
0x1682   :  { %v3011_v26 = vpop.eup %3010 }
0x1683   :  { %v1750_v28 = vmul.f32 %v3011_v26, %v3009_v25 }
0x1685   :  { %1752 = vrot.lane.b32.xlu0 %v1750_v28, %s3067_s5 }
0x1686   :  { %v303_v31 = vpop.permute.xlu1 %302 }
0x1687   :  { %v352_v33 = vmul.f32 %v3285_v54, %v303_v31  ;;  %v353_v45 = vmul.f32 %v3294_v1, %v303_v31 }
0x1689   :  { %409 = vperm.xlu0 %2866, %v236_v15  }
0x16f7   :  { %v1753_v29 = vpop.permute.xlu0 %1752 }
0x16f8   :  { %2452 = vmatmul.mubr.msk.f32.vlgmr.msra.gmra.mrb[16].mxu0 %vm552_vm1, %v1753_v29 }
0x16f9   :  { %2794 = vmatpush1.bf16.msra.mxu0 %v3188_v20  ;;  %2020 = vmatprep.mubr.f32.mxu0 %v3064_v3 }
0x16fa   :  { %2796 = vmatprep.subr.bf16.mxu0 %v3193_v22 }
0x16fd   :  { %2798 = vmatpush1.bf16.msra.mxu0 %v3210_v27 }
0x16fe   :  { %2800 = vmatprep.subr.bf16.mxu0 %v3233_v34 }
0x1701   :  { %2802 = vmatpush1.bf16.msra.mxu0 %v3235_v35 }
0x1702   :  { %2804 = vmatprep.subr.bf16.mxu0 %v3237_v37 }
0x1705   :  { %2806 = vmatpush1.bf16.msra.mxu0 %v3257_v42 }
0x1708   :  { %v410_v30 = vpop.permute.xlu0 %409 }
0x1709   :  { %v456_v32 = vmul.f32 %v3287_v55, %v410_v30  ;;  %v457_v43 = vmul.f32 %v3296_v2, %v410_v30 }
0x170b   :  { %v488_v36 = vadd.f32 %v456_v32, %v352_v33  ;;  %v489_v46 = vadd.f32 %v457_v43, %v353_v45 }
0x170d   :  { %v528_v38 = vadd.f32 %v3291_v60, %v488_v36  ;;  %v529_v47 = vadd.f32 %v3300_v10, %v489_v46 }
0x17cb   :  { %v1822_v39 = vpop.f32.mrb[16].mxu0 }
0x17cc   :  { %v1827_v40 = vadd.f32 %v1822_v39, %v528_v38  ;;  %v1824_v41 = vpop.f32.mrb[17].mxu0 }
0x17cd   :  { %v1828_v48 = vadd.f32 %v1824_v41, %v529_v47 }
0x17ce   :  { %v2453_v44 = vmul.f32 -1.442695, %v1827_v40 }
0x17cf   :  { %v2454_v57 = vmul.f32 -1.442695, %v1828_v48 }
0x17d0   :  { %3012 = vpow2.f32 %v2453_v44 }
0x17d1   :  { %3014 = vtanh.f32 %v1828_v48 }
0x17da   :  { %v3013_v49 = vpop.eup %3012 }
0x17db   :  { %v1832_v50 = vadd.f32 1.0, %v3013_v49  ;;  %v3015_v51 = vpop.eup %3014 }
0x17dd   :  { %3016 = vrcp.f32 %v1832_v50 }
0x17de   :  { %3018 = vpow2.f32 %v2454_v57 }
0x17e7   :  { %v3017_v52 = vpop.eup %3016 }
0x17e8   :  { %v1843_v53 = vmul.f32 %v3017_v52, %v3015_v51  ;;  %v3019_v58 = vpop.eup %3018  ;;  %v1842_v61 = vmul.f32 %v3017_v52, %v1748_v24 }
0x17e9   :  { %v1839_v59 = vadd.f32 1.0, %v3019_v58 }
0x17ea   :  { %1845 = vrot.lane.b32.xlu1 %v1843_v53, %s3067_s5 }
0x17eb   :  { %3020 = vrcp.f32 %v1839_v59 }
0x17ee   :  { %307 = vperm.xlu1 %2867, %v237_v56  }
0x17f5   :  { %v3021_v0 = vpop.eup %3020 }
0x185c   :  { %v1846_v62 = vpop.permute.xlu1 %1845 }
0x185d   :  { %v1848_v63 = vadd.f32 %v1846_v62, %v1842_v61  ;;  %v239_v62 = vld [vmem:[%s3716_s0 + $0x78] sm:$0xff] }
0x185f   :  { %3022 = vtanh.f32 %v1848_v63 }
0x1869   :  { %v3023_v4 = vpop.eup %3022 }
0x186a   :  { %v1850_v5 = vmul.f32 %v3023_v4, %v3021_v0 }
0x186c   :  { %1852 = vrot.lane.b32.xlu0 %v1850_v5, %s3067_s5 }
0x186d   :  { %v308_v16 = vpop.permute.xlu1 %307 }
0x1870   :  { %413 = vperm.xlu0 %2866, %v237_v56  }
0x18de   :  { %v1853_v6 = vpop.permute.xlu0 %1852 }
0x18df   :  { %2455 = vmatmul.mubr.msk.f32.vlgmr.msra.gmra.mrb[12].mxu1 %vm552_vm1, %v1853_v6 }
0x18e0   :  { %2810 = vmatpush1.bf16.msra.mxu1 %v3188_v20  ;;  %2120 = vmatprep.mubr.f32.mxu1 %v3064_v3  ;;  %v354_v20 = vmul.f32 %v3285_v54, %v308_v16 }
0x18e1   :  { %2812 = vmatprep.subr.bf16.mxu1 %v3193_v22 }
0x18e4   :  { %2814 = vmatpush1.bf16.msra.mxu1 %v3210_v27 }
0x18e5   :  { %2816 = vmatprep.subr.bf16.mxu1 %v3233_v34 }
0x18e8   :  { %2818 = vmatpush1.bf16.msra.mxu1 %v3235_v35  ;;  %v355_v35 = vmul.f32 %v3294_v1, %v308_v16 }
0x18e9   :  { %2820 = vmatprep.subr.bf16.mxu1 %v3237_v37 }
0x18ec   :  { %2822 = vmatpush1.bf16.msra.mxu1 %v3257_v42 }
0x18ef   :  { %v414_v7 = vpop.permute.xlu0 %413 }
0x18f0   :  { %v458_v8 = vmul.f32 %v3287_v55, %v414_v7  ;;  %v459_v34 = vmul.f32 %v3296_v2, %v414_v7 }
0x18f2   :  { %v490_v9 = vadd.f32 %v458_v8, %v354_v20  ;;  %v491_v37 = vadd.f32 %v459_v34, %v355_v35 }
0x18f4   :  { %v530_v11 = vadd.f32 %v3291_v60, %v490_v9  ;;  %v531_v42 = vadd.f32 %v3300_v10, %v491_v37 }
0x19b2   :  { %v1922_v22 = vpop.f32.mrb[12].mxu1 }
0x19b3   :  { %v1927_v12 = vadd.f32 %v1922_v22, %v530_v11  ;;  %v1924_v27 = vpop.f32.mrb[13].mxu1 }
0x19b4   :  { %v1928_v14 = vadd.f32 %v1924_v27, %v531_v42 }
0x19b5   :  { %v2456_v13 = vmul.f32 -1.442695, %v1927_v12 }
0x19b6   :  { %v2457_v24 = vmul.f32 -1.442695, %v1928_v14 }
0x19b7   :  { %3024 = vpow2.f32 %v2456_v13 }
0x19b8   :  { %3026 = vtanh.f32 %v1928_v14 }
0x19c1   :  { %v3025_v15 = vpop.eup %3024 }
0x19c2   :  { %v1932_v17 = vadd.f32 1.0, %v3025_v15  ;;  %v3027_v18 = vpop.eup %3026 }
0x19c4   :  { %3028 = vrcp.f32 %v1932_v17 }
0x19c5   :  { %3030 = vpow2.f32 %v2457_v24 }
0x19ce   :  { %v3029_v19 = vpop.eup %3028 }
0x19cf   :  { %v1943_v21 = vmul.f32 %v3029_v19, %v3027_v18  ;;  %v3031_v25 = vpop.eup %3030  ;;  %v1942_v28 = vmul.f32 %v3029_v19, %v1848_v63 }
0x19d0   :  { %v1939_v26 = vadd.f32 1.0, %v3031_v25  ;;  %v3068_v25 = vmov 0.0|0.0  }
0x19d1   :  { %1945 = vrot.lane.b32.xlu1 %v1943_v21, %s3067_s5  ;;  %2823 = vmatprep.subr.bf16.mxu0 %v3068_v25 }
0x19d2   :  { %3032 = vrcp.f32 %v1939_v26  ;;  %2835 = vmatprep.subr.bf16.mxu1 %v3068_v25 }
0x19d5   :  { %312 = vperm.xlu1 %2867, %v238_v23  }
0x19dc   :  { %v3033_v31 = vpop.eup %3032 }
0x1a43   :  { %v1946_v29 = vpop.permute.xlu1 %1945 }
0x1a44   :  { %v1948_v30 = vadd.f32 %v1946_v29, %v1942_v28  ;;  %v2154_v28 = vld [vmem:[%s3719_s6 + $0x18] sm:$0xff] }
0x1a46   :  { %3034 = vtanh.f32 %v1948_v30 }
0x1a50   :  { %v3035_v32 = vpop.eup %3034 }
0x1a51   :  { %v1950_v33 = vmul.f32 %v3035_v32, %v3033_v31  ;;  %v2156_v31 = vld [vmem:[%s3719_s6 + $0x28] sm:$0xff] }
0x1a53   :  { %1952 = vrot.lane.b32.xlu0 %v1950_v33, %s3067_s5  ;;  %v2158_v33 = vld [vmem:[%s3719_s6 + $0x38] sm:$0xff] }
0x1a54   :  { %v313_v39 = vpop.permute.xlu1 %312 }
0x1a55   :  { %v356_v41 = vmul.f32 %v3285_v54, %v313_v39  ;;  %v357_v50 = vmul.f32 %v3294_v1, %v313_v39 }
0x1a57   :  { %417 = vperm.xlu0 %2866, %v238_v23  }
0x1ac5   :  { %v1953_v36 = vpop.permute.xlu0 %1952 }
0x1ac6   :  { %2458 = vmatmul.mubr.msk.f32.vlgmr.msra.gmra.mrb[18].mxu0 %vm552_vm1, %v1953_v36 }
0x1ac7   :  { %2513 = vmatprep.mubr.msk.f32.mxu0 %vm3069_vm2, %v3064_v3 }
0x1ad6   :  { %v418_v38 = vpop.permute.xlu0 %417 }
0x1ad7   :  { %v460_v40 = vmul.f32 %v3287_v55, %v418_v38  ;;  %v461_v48 = vmul.f32 %v3296_v2, %v418_v38 }
0x1ad9   :  { %v492_v43 = vadd.f32 %v460_v40, %v356_v41  ;;  %v493_v51 = vadd.f32 %v461_v48, %v357_v50  ;;  %v2279_v50 = vld [vmem:[%s3720_s10 + $0x8] sm:$0xff] }
0x1adb   :  { %v532_v44 = vadd.f32 %v3291_v60, %v492_v43  ;;  %v533_v52 = vadd.f32 %v3300_v10, %v493_v51 }
0x1b99   :  { %v2022_v45 = vpop.f32.mrb[18].mxu0 }
0x1b9a   :  { %v2027_v46 = vadd.f32 %v2022_v45, %v532_v44  ;;  %v2024_v47 = vpop.f32.mrb[19].mxu0 }
0x1b9b   :  { %v2028_v53 = vadd.f32 %v2024_v47, %v533_v52  ;;  %v2280_v52 = vld [vmem:[%s3720_s10 + $0x10] sm:$0xff] }
0x1b9c   :  { %v2459_v49 = vmul.f32 -1.442695, %v2027_v46 }
0x1b9d   :  { %v2460_v63 = vmul.f32 -1.442695, %v2028_v53 }
0x1b9e   :  { %3036 = vpow2.f32 %v2459_v49  ;;  %v2278_v49 = vld [vmem:[%s3720_s10] sm:$0xff] }
0x1b9f   :  { %3038 = vtanh.f32 %v2028_v53  ;;  %v2836_v51 = vpack.c.bf16 %v2279_v50, %v2278_v49  ;;  %v2281_v53 = vld [vmem:[%s3720_s10 + $0x18] sm:$0xff] }
0x1ba8   :  { %v3037_v56 = vpop.eup %3036 }
0x1ba9   :  { %v2032_v57 = vadd.f32 1.0, %v3037_v56  ;;  %v3039_v58 = vpop.eup %3038  ;;  %v2839_v56 = vpack.c.bf16 %v2281_v53, %v2280_v52 }
0x1bab   :  { %3040 = vrcp.f32 %v2032_v57  ;;  %v2282_v57 = vld [vmem:[%s3720_s10 + $0x20] sm:$0xff] }
0x1bac   :  { %3042 = vpow2.f32 %v2460_v63 }
0x1bb5   :  { %v3041_v59 = vpop.eup %3040 }
0x1bb6   :  { %v2043_v61 = vmul.f32 %v3041_v59, %v3039_v58  ;;  %v3043_v0 = vpop.eup %3042  ;;  %v2042_v5 = vmul.f32 %v3041_v59, %v1948_v30  ;;  %v2155_v30 = vld [vmem:[%s3719_s6 + $0x20] sm:$0xff]  ;;  %v2283_v58 = vld [vmem:[%s3720_s10 + $0x28] sm:$0xff] }
0x1bb7   :  { %v2039_v4 = vadd.f32 1.0, %v3043_v0  ;;  %v2830_v32 = vpack.c.bf16 %v2156_v31, %v2155_v30  ;;  %v2842_v59 = vpack.c.bf16 %v2283_v58, %v2282_v57  ;;  %v2286_v0 = vld [vmem:[%s3720_s10 + $0x40] sm:$0xff] }
0x1bb8   :  { %2045 = vrot.lane.b32.xlu1 %v2043_v61, %s3067_s5  ;;  %v2284_v61 = vld [vmem:[%s3720_s10 + $0x30] sm:$0xff]  ;;  %v2466_v31 = vld [vmem:[%s3725_s8] ss:$0 sm:$0xff] }
0x1bb9   :  { %3044 = vrcp.f32 %v2039_v4  ;;  %v2287_v4 = vld [vmem:[%s3720_s10 + $0x48] sm:$0xff] }
0x1bbc   :  { %317 = vperm.xlu1 %2867, %v239_v62  }
0x1bc3   :  { %v3045_v16 = vpop.eup %3044 }
0x1c2a   :  { %v2046_v6 = vpop.permute.xlu1 %2045 }
0x1c2b   :  { %v3588_v7 = vadd.f32 %v2046_v6, %v2042_v5  ;;  %v2848_v5 = vpack.c.bf16 %v2287_v4, %v2286_v0  ;;  %v2288_v6 = vld [vmem:[%s3720_s10 + $0x50] sm:$0xff] }
0x1c2d   :  { %3046 = vtanh.f32 %v3588_v7 }
0x1c37   :  { %v3047_v8 = vpop.eup %3046 }
0x1c38   :  { %v2050_v20 = vmul.f32 %v3047_v8, %v3045_v16  ;;  %v2290_v8 = vld [vmem:[%s3720_s10 + $0x60] sm:$0xff] }
0x1c3a   :  { %2052 = vrot.lane.b32.xlu0 %v2050_v20, %s3067_s5  ;;  %v2291_v20 = vld [vmem:[%s3720_s10 + $0x68] sm:$0xff] }
0x1c3b   :  { %v318_v22 = vpop.permute.xlu1 %317 }
0x1c3c   :  { %v358_v27 = vmul.f32 %v3285_v54, %v318_v22  ;;  %v359_v17 = vmul.f32 %v3294_v1, %v318_v22  ;;  %v2151_v1 = vld [vmem:[%s3719_s6] sm:$0xff]  ;;  %v2293_v22 = vld [vmem:[%s3720_s10 + $0x78] sm:$0xff] }
0x1c3e   :  { %421 = vperm.xlu0 %2866, %v239_v62   ;;  %v2285_v62 = vld [vmem:[%s3720_s10 + $0x38] sm:$0xff] }
0x1c3f   :  { %v2845_v63 = vpack.c.bf16 %v2285_v62, %v2284_v61 }
0x1cac   :  { %v2053_v9 = vpop.permute.xlu0 %2052 }
0x1cad   :  { %2461 = vmatmul.mubr.msk.f32.vlgmr.msra.gmra.mrb[14].mxu1 %vm552_vm1, %v2053_v9  ;;  %v2854_v9 = vpack.c.bf16 %v2291_v20, %v2290_v8 }
0x1cae   :  { %2548 = vmatprep.mubr.msk.f32.mxu1 %vm3069_vm2, %v3064_v3  ;;  %v2157_v3 = vld [vmem:[%s3719_s6 + $0x30] sm:$0xff]  ;;  %2837 = vmatpush3.bf16.msra.mxu1 %v2836_v51 }
0x1caf   :  { %v2833_v36 = vpack.c.bf16 %v2158_v33, %v2157_v3  ;;  %2838 = vmatprep.subr.bf16.mxu1 %v3068_v25  ;;  %v2467_v3 = vld [vmem:[%s3726_s9] ss:$0 sm:$0xff] }
0x1cb2   :  { %2840 = vmatpush3.bf16.msra.mxu1 %v2839_v56 }
0x1cb3   :  { %2841 = vmatprep.subr.bf16.mxu1 %v3068_v25 }
0x1cb6   :  { %2843 = vmatpush3.bf16.msra.mxu1 %v2842_v59 }
0x1cb7   :  { %2844 = vmatprep.subr.bf16.mxu1 %v3068_v25 }
0x1cba   :  { %2846 = vmatpush3.bf16.msra.mxu1 %v2845_v63 }
0x1cbb   :  { %2847 = vmatprep.subr.bf16.mxu1 %v3068_v25 }
0x1cbd   :  { %v422_v11 = vpop.permute.xlu0 %421 }
0x1cbe   :  { %v462_v12 = vmul.f32 %v3287_v55, %v422_v11  ;;  %v463_v14 = vmul.f32 %v3296_v2, %v422_v11  ;;  %v2152_v2 = vld [vmem:[%s3719_s6 + $0x8] sm:$0xff]  ;;  %2849 = vmatpush3.bf16.msra.mxu1 %v2848_v5  ;;  %v2292_v11 = vld [vmem:[%s3720_s10 + $0x70] sm:$0xff] }
0x1cbf   :  { %v2824_v26 = vpack.c.bf16 %v2152_v2, %v2151_v1  ;;  %2850 = vmatprep.subr.bf16.mxu1 %v3068_v25 }
0x1cc0   :  { %v494_v34 = vadd.f32 %v462_v12, %v358_v27  ;;  %v495_v18 = vadd.f32 %v463_v14, %v359_v17  ;;  %v2857_v12 = vpack.c.bf16 %v2293_v22, %v2292_v11  ;;  %v19_v27 = vstv %s3721_s11 }
0x1cc1   :  { %2825 = vmatpush3.bf16.msra.mxu0 %v2824_v26  ;;  %20 = vst [vmem:[#allocation2] sm:$0x1] %v19_v27 }
0x1cc2   :  { %v534_v13 = vadd.f32 %v3291_v60, %v494_v34  ;;  %v535_v19 = vadd.f32 %v3300_v10, %v495_v18  ;;  %v2153_v10 = vld [vmem:[%s3719_s6 + $0x10] sm:$0xff]  ;;  %2826 = vmatprep.subr.bf16.mxu0 %v3068_v25  ;;  %v21_v34 = vstv %s3722_s12 }
0x1cc3   :  { %v2827_v29 = vpack.c.bf16 %v2154_v28, %v2153_v10  ;;  %22 = vst [vmem:[#allocation3] sm:$0x1] %v21_v34 }
0x1cc5   :  { %2828 = vmatpush3.bf16.msra.mxu0 %v2827_v29 }
0x1cc6   :  { %2829 = vmatprep.subr.bf16.mxu0 %v3068_v25 }
0x1cc9   :  { %2831 = vmatpush3.bf16.msra.mxu0 %v2830_v32 }
0x1cca   :  { %2832 = vmatprep.subr.bf16.mxu0 %v3068_v25 }
0x1ccd   :  { %2834 = vmatpush3.bf16.msra.mxu0 %v2833_v36 }
0x1d80   :  { %v2122_v35 = vpop.f32.mrb[14].mxu1 }
0x1d81   :  { %v2127_v37 = vadd.f32 %v2122_v35, %v534_v13  ;;  %v2124_v42 = vpop.f32.mrb[15].mxu1  ;;  %v23_v13 = vstv %s3723_s13  ;;  %v2464_v35 = vld [vmem:[%s3724_s7] ss:$0 sm:$0xff] }
0x1d82   :  { %v2128_v21 = vadd.f32 %v2124_v42, %v535_v19  ;;  %24 = vst [vmem:[#allocation4] sm:$0x1] %v23_v13 }
0x1d83   :  { %v2462_v15 = vmul.f32 -1.442695, %v2127_v37 }
0x1d84   :  { %v2463_v38 = vmul.f32 -1.442695, %v2128_v21 }
0x1d85   :  { %3048 = vpow2.f32 %v2462_v15 }
0x1d86   :  { %3050 = vtanh.f32 %v2128_v21 }
0x1d8f   :  { %v3049_v23 = vpop.eup %3048 }
0x1d90   :  { %v2132_v55 = vadd.f32 1.0, %v3049_v23  ;;  %v3051_v54 = vpop.eup %3050 }
0x1d92   :  { %3052 = vrcp.f32 %v2132_v55 }
0x1d93   :  { %3054 = vpow2.f32 %v2463_v38 }
0x1d9c   :  { %v3053_v24 = vpop.eup %3052 }
0x1d9d   :  { %v2143_v60 = vmul.f32 %v3053_v24, %v3051_v54  ;;  %v3055_v39 = vpop.eup %3054  ;;  %v2142_v41 = vmul.f32 %v3053_v24, %v3588_v7  ;;  %v2289_v7 = vld [vmem:[%s3720_s10 + $0x58] sm:$0xff] }
0x1d9e   :  { %v2139_v40 = vadd.f32 1.0, %v3055_v39  ;;  %v2851_v16 = vpack.c.bf16 %v2289_v7, %v2288_v6  ;;  %v2468_v39 = vld [vmem:[#allocation2] ss:$0 sm:$0xff]  ;;  %v2469_v6 = vld [vmem:[#allocation3] ss:$0 sm:$0xff] }
0x1d9f   :  { %2145 = vrot.lane.b32.xlu1 %v2143_v60, %s3067_s5 }
0x1da0   :  { %3056 = vrcp.f32 %v2139_v40  ;;  %2852 = vmatpush3.bf16.msra.mxu1 %v2851_v16  ;;  %v2470_v16 = vld [vmem:[#allocation4] ss:$0 sm:$0xff] }
0x1da1   :  { %2853 = vmatprep.subr.bf16.mxu1 %v3068_v25 }
0x1da4   :  { %2855 = vmatpush3.bf16.msra.mxu1 %v2854_v9 }
0x1da5   :  { %2856 = vmatprep.subr.bf16.mxu1 %v3068_v25 }
0x1da8   :  { %2858 = vmatpush3.bf16.msra.mxu1 %v2857_v12 }
0x1daa   :  { %v3057_v45 = vpop.eup %3056 }
0x1e11   :  { %v2146_v43 = vpop.permute.xlu1 %2145 }
0x1e12   :  { %v2148_v44 = vadd.f32 %v2146_v43, %v2142_v41 }
0x1e14   :  { %3058 = vtanh.f32 %v2148_v44 }
0x1e1e   :  { %v3059_v46 = vpop.eup %3058 }
0x1e1f   :  { %v2150_v47 = vmul.f32 %v3059_v46, %v3057_v45 }
0x1e21   :  { %2169 = vrot.lane.b32.xlu0 %v2150_v47, %s3067_s5 }
0x1e93   :  { %v2170_v48 = vpop.permute.xlu0 %2169 }
0x1e94   :  { %2514 = vmatmul.mubr.msk.f32.vlgmr.msra.gmra.mrb[20].mxu0 %vm552_vm1, %v2170_v48 }
0x1f67   :  { %v2239_v37 = vpop.f32.mrb[20].mxu0 }
0x1f68   :  { %v2240_v42 = vadd.f32 %v2464_v35, %v2239_v37  ;;  %v2515_v14 = vpop.f32.mrb[21].mxu0 }
0x1f6a   :  { %v2243_v15 = vrot.slane %v2240_v42, 4 }
0x1f6c   :  { %v2244_v17 = vadd.f32 %v2243_v15, %v2240_v42 }
0x1f6e   :  { %v2245_v18 = vrot.slane %v2244_v17, 2 }
0x1f70   :  { %v2246_v19 = vadd.f32 %v2245_v18, %v2244_v17 }
0x1f72   :  { %v2247_v21 = vrot.slane %v2246_v19, 1 }
0x1f74   :  { %v2248_v23 = vadd.f32 %v2247_v21, %v2246_v19 }
0x1f76   :  { %v2250_v55 = vmul.f32 0.125, %v2248_v23 }
0x1f78   :  { %v2251_v54 = vsub.f32 %v2240_v42, %v2250_v55 }
0x1f7a   :  { %v2252_v24 = vmul.f32 %v2251_v54, %v2251_v54 }
0x1f7c   :  { %v2253_v60 = vrot.slane %v2252_v24, 4 }
0x1f7e   :  { %v2254_v25 = vadd.f32 %v2253_v60, %v2252_v24 }
0x1f80   :  { %v2255_v1 = vrot.slane %v2254_v25, 2 }
0x1f82   :  { %v2256_v2 = vadd.f32 %v2255_v1, %v2254_v25 }
0x1f84   :  { %v2257_v10 = vrot.slane %v2256_v2, 1 }
0x1f86   :  { %v2258_v26 = vadd.f32 %v2257_v10, %v2256_v2 }
0x1f88   :  { %v2259_v28 = vmul.f32 0.125, %v2258_v26 }
0x1f8a   :  { %v2260_v29 = vadd.f32 1e-05, %v2259_v28 }
0x1f8c   :  { %3060 = vrsqrt.f32 %v2260_v29 }
0x1f96   :  { %v3061_v30 = vpop.eup %3060 }
0x1f97   :  { %v2262_v32 = vmul.f32 %v3061_v30, %v2251_v54 }
0x1f99   :  { %v2269_v33 = vmul.f32 %v2466_v31, %v2262_v32 }
0x1f9b   :  { %v2276_v36 = vadd.f32 %v2467_v3, %v2269_v33 }
0x1f9d   :  { %v2277_v38 = vmax.f32 %v2276_v36, 0.0 }
0x1f9f   :  { %2549 = vmatmul.mubr.f32.vlgmr.msra.gmra.mrb[16].mxu1 %v2277_v38 }
0x2072   :  { %v2369_v40 = vpop.f32.mrb[16].mxu1 }
0x2073   :  { %v2370_v41 = vadd.f32 %v2468_v39, %v2369_v40  ;;  %v2550_v43 = vpop.f32.mrb[17].mxu1 }
0x2075   :  { %v2374_v44 = vsel %vm2373_vm3, %v2370_v41, 0.0 }
0x2076   :  { %v2375_v45 = vrot.slane %v2374_v44, 4 }
0x2078   :  { %v2376_v46 = vadd.f32 %v2375_v45, %v2374_v44 }
0x207a   :  { %v2377_v47 = vrot.slane %v2376_v46, 2 }
0x207c   :  { %v2378_v48 = vadd.f32 %v2377_v47, %v2376_v46 }
0x207e   :  { %v2379_v49 = vrot.slane %v2378_v48, 1 }
0x2080   :  { %v2380_v50 = vadd.f32 %v2379_v49, %v2378_v48 }
0x2082   :  { %v2381_v51 = vmul.f32 0.125, %v2380_v50 }
0x2084   :  { %v2382_v52 = vsub.f32 %v2370_v41, %v2381_v51 }
0x2086   :  { %v2383_v53 = vmul.f32 %v2382_v52, %v2382_v52 }
0x2088   :  { %v2384_v56 = vsel %vm2373_vm3, %v2383_v53, 0.0 }
0x2089   :  { %v2385_v57 = vrot.slane %v2384_v56, 4 }
0x208b   :  { %v2386_v58 = vadd.f32 %v2385_v57, %v2384_v56 }
0x208d   :  { %v2387_v59 = vrot.slane %v2386_v58, 2 }
0x208f   :  { %v2388_v61 = vadd.f32 %v2387_v59, %v2386_v58 }
0x2091   :  { %v2389_v62 = vrot.slane %v2388_v61, 1 }
0x2093   :  { %v2390_v63 = vadd.f32 %v2389_v62, %v2388_v61 }
0x2095   :  { %v2391_v0 = vmul.f32 0.125, %v2390_v63 }
0x2097   :  { %v2392_v4 = vadd.f32 1e-05, %v2391_v0 }
0x2099   :  { %3062 = vrsqrt.f32 %v2392_v4 }
0x20a3   :  { %v3063_v5 = vpop.eup %3062 }
0x20a4   :  { %v2394_v7 = vmul.f32 %v3063_v5, %v2382_v52 }
0x20a6   :  { %v2401_v8 = vmul.f32 %v2469_v6, %v2394_v7 }
0x20a8   :  { %v2408_v20 = vadd.f32 %v2470_v16, %v2401_v8 }
0x20aa   :  { %v2409_v9 = vmax.f32 %v2408_v20, 0.0 }
0x20ac   :  { %2410 = vst.msk [vmem:[%s3727_s14] sm:$0xff] %vm2373_vm3, %v2409_v9 }

</bundles_post_ra>
